<compile_context>
chip_gen: v7x
topology: tpu7x:2x2x1
jax: 0.10.0
libtpu: 0.0.40
codegen_flags: <defaults>
</compile_context>

<pallas_src>
import functools

import numpy as np
import jax
import jax.numpy as jnp
from jax import lax
from jax.experimental import pallas as pl
from jax.experimental.pallas import tpu as pltpu

DIM = 32          # `dim` of HLFAE
RATIO = 16        # HLFAE ratio
SE_RED = 16       # SEAttention reduction
EPS = 1e-5        # BatchNorm eps
DILATIONS = (1, 3, 5, 7)

# unique conv tap offsets (0 first, then +-d per dilation).  The stacked
# dilated-conv weight and the in-kernel tap stacks share this ordering.
OFFSETS = (0,) + tuple(s * d for d in DILATIONS for s in (-1, 1))
NUM_OFFSETS = len(OFFSETS)

# dtype of the MXU operands of the conv matmuls (activations + weights).
# bf16 hits the native MXU rate on all generations; everything numerically
# sensitive (BN-folded biases, gates, residual) stays f32.
# Set to jnp.float32 for strict 1e-2 parity with the f32 reference.
MATMUL_DTYPE = jnp.bfloat16


# ----------------------------------------------------------------------------
# device-aware knobs
# ----------------------------------------------------------------------------
def _device_kind():
    try:
        return jax.devices()[0].device_kind.lower()
    except Exception:
        return ""


def tap_dtype_for_device():
    # bf16 elementwise (roll/mask/concat) only where the VPU has a native bf16
    # path (v6e / v7x); pre-v6 chips keep the tap path in f32.
    kind = _device_kind()
    if any(t in kind for t in ("v6", "v7", "7x")):
        return MATMUL_DTYPE
    return jnp.float32


def choose_group(L, B):
    # pack G batch elements per tile so the lane axis is MXU-filling.
    kind = _device_kind()
    g128 = max(1, -(-128 // L))
    g256 = max(1, -(-256 // L))
    if "v6" in kind and B >= g256:
        return g256                       # 256-wide MXU, single TensorCore
    if any(t in kind for t in ("v7", "7x")) and -(-B // g256) >= 2:
        return g256                       # only if both TCs still get grid steps
    return g128


# ----------------------------------------------------------------------------
# structural matrices (per-segment block-diagonal pooling / interpolation etc.)
# ----------------------------------------------------------------------------
def avgpool_matrix(L):
    L2 = L // 2
    P = np.zeros((L, L2), np.float32)
    for j in range(L2):
        P[2 * j, j] = 0.5
        P[2 * j + 1, j] = 0.5
    return P


def linear_interp_matrix(L_in, L_out):
    # matches F.interpolate(mode='linear', align_corners=False)
    U = np.zeros((L_in, L_out), np.float32)
    ratio = L_in / L_out
    for i in range(L_out):
        s = max(ratio * (i + 0.5) - 0.5, 0.0)
        i0 = min(int(np.floor(s)), L_in - 1)
        i1 = min(i0 + 1, L_in - 1)
        w1 = s - i0
        U[i0, i] += 1.0 - w1
        U[i1, i] += w1
    return U


def block_diag(M, G):
    r, c = M.shape
    out = np.zeros((G * r, G * c), np.float32)
    for g in range(G):
        out[g * r:(g + 1) * r, g * c:(g + 1) * c] = M
    return out


def offset_masks(L, G):
    # row i: valid-lane mask for conv tap offset OFFSETS[i] (zero pad at
    # segment boundaries, which also isolates grouped batch elements).
    # Row 0 (offset 0) is all ones.
    GL = G * L
    lpos = np.arange(GL) % L
    rows = [((lpos + o >= 0) & (lpos + o < L)).astype(np.float32)
            for o in OFFSETS]
    return np.stack(rows)[:, None, :]                      # (NOFF, 1, GL)


# ----------------------------------------------------------------------------
# Pallas kernel: full HLFAE forward for one group of G batch elements
# ----------------------------------------------------------------------------
def hlfae_kernel(x_ref, pu_ref, avgsel_ref, bcast_ref, mask_ref, bias_ref,
                 wdil_ref, wm1_ref, wm2_ref, wcbr_ref, wf1_ref, fcs_ref,
                 o_ref, *, seg_len, dim):
    f32 = jnp.float32
    C = dim
    cdt = wdil_ref.dtype                  # MXU operand dtype of conv matmuls
    tdt = mask_ref.dtype                  # tap/roll/mask dtype (bf16 on v6e/v7x)
    x = x_ref[0]                          # (C, GL) float32
    GL = x.shape[-1]

    def mm(a, b):                         # f32 matmul (structural / gate paths)
        return jnp.dot(a, b, preferred_element_type=f32)

    def mm_lp(w_ref, act):                # low-precision conv matmul (MXU)
        return jnp.dot(w_ref[...], act.astype(cdt), preferred_element_type=f32)

    def relu(v):
        return jnp.maximum(v, 0.0)

    def sigmoid(v):
        return pl.reciprocal(1.0 + jnp.exp(-v), approx=True)

    def rolled(v, off_idx):
        # out[:, l] = v[:, l + OFFSETS[off_idx]] with per-segment zero padding
        o = OFFSETS[off_idx]
        if o == 0:
            return v
        return pltpu.roll(v, (-o) % GL, 1) * mask_ref[off_idx]

    def tap_stack(v, off_idxs):
        # stack shifted copies along channels so a k-tap conv is ONE matmul
        return jnp.concatenate([rolled(v, i) for i in off_idxs], axis=0)

    # ---- low / high split: AvgPool1d(2) + linear upsample fused into PU ----
    up = mm(x, pu_ref[...])                                   # (C, GL)
    high = (x - up).astype(tdt)

    # ---- feature_extraction(high): 4 dilated conv+BN+ReLU branches fused ----
    # BN scale folded into weight rows; bias = one packed f32 VPU add.
    cat = relu(mm_lp(wdil_ref, tap_stack(high, range(NUM_OFFSETS)))
               + bias_ref[0:4 * C, :]).astype(tdt)            # (4C, GL)

    # convmlp: conv(4C->2C, k3)+BN+ReLU then conv(2C->C, k1)+BN+ReLU
    m1 = relu(mm_lp(wm1_ref, tap_stack(cat, (0, 1, 2)))
              + bias_ref[4 * C:6 * C, :])                     # (2C, GL)
    high_out = relu(mm_lp(wm2_ref, m1) + bias_ref[6 * C:7 * C, :])   # (C, GL)

    # ---- channel attention on low (one original batch element == segment) ----
    avg_v = mm(x, avgsel_ref[0])                              # (C, G): mean(low)==mean(x)
    # max(low): pairwise means on even lanes + roll/max doubling tree starting
    # at stride 2.  Only lane 0 of each segment is read by the selection
    # matmul and all of its contributing lanes are at even offsets <= L-2,
    # so neither a -1e30 select nor an even-lane mask is needed.
    pm = 0.5 * (x + pltpu.roll(x, GL - 1, 1))                 # (x[l]+x[l+1])/2
    cov = 0
    while 2 * cov + 2 <= seg_len - 2:
        w = cov + 2
        pm = jnp.maximum(pm, pltpu.roll(pm, GL - w, 1))
        cov += w
    if cov < seg_len - 2:
        w = seg_len - 2 - cov
        pm = jnp.maximum(pm, pltpu.roll(pm, GL - w, 1))
    max_v = mm(pm, avgsel_ref[1])                             # (C, G)

    # fc2(relu(fc1(avg))) + fc2(relu(fc1(max))) as a single zero-padded matmul
    # chain on the sublane-stacked (2C, G) operand (block-diag fc1, tiled fc2).
    v2 = jnp.concatenate([avg_v, max_v], axis=0)              # (2C, G)
    logits = mm(fcs_ref[0], relu(mm(wf1_ref[...], v2)))       # (C, G)
    gate = sigmoid(logits)                                    # sigmoid BEFORE broadcast
    low_up = up * mm(gate, bcast_ref[...])    # == upsample(low*gate): gate const / segment

    # ---- CBR(2C -> C, k3) on concat([high, low]) ----
    cat2 = jnp.concatenate([high_out.astype(tdt), low_up.astype(tdt)], axis=0)
    y = relu(mm_lp(wcbr_ref, tap_stack(cat2, (0, 1, 2)))
             + bias_ref[7 * C:8 * C, :])                      # (C, GL)

    # ---- SEAttention + residual ----
    se = mm(y, avgsel_ref[0])                                 # (C, G)
    z = mm(fcs_ref[2], relu(mm(fcs_ref[1], se)))              # (C, G)
    o_ref[0] = (y * mm(sigmoid(z), bcast_ref[...]) + x).astype(o_ref.dtype)


# ----------------------------------------------------------------------------
# wrapper
# ----------------------------------------------------------------------------
def hlfae_forward(x4d, kd, G):
    assert x4d.ndim == 4, f'Expected 4D input tensor, got shape {x4d.shape}'
    assert x4d.shape[3] == 1, f'Expected width 1, got {x4d.shape[3]}'
    B, C, L, _ = x4d.shape
    assert L % 2 == 0, f'AvgPool1d(2) needs an even length, got L={L}'
    x = x4d[..., 0]                               # (B, C, L)

    NG = -(-B // G)
    Bp = NG * G
    if Bp != B:                                   # zero-pad to a full group
        x = jnp.pad(x, ((0, Bp - B), (0, 0), (0, 0)))
    GL = G * L

    # lane-dense packing: (Bp, C, L) -> (NG, C, G*L), segment g = batch n*G+g
    xg = x.reshape(NG, G, C, L).transpose(0, 2, 1, 3).reshape(NG, C, GL)

    def rep(a):
        return pl.BlockSpec(a.shape, lambda n, _nd=a.ndim: (0,) * _nd)

    args = (xg, kd['pu'], kd['avgsel'], kd['bcast'], kd['mask'], kd['bias'],
            kd['wdil'], kd['wm1'], kd['wm2'], kd['wcbr'], kd['wf1'], kd['fcs'])

    out = pl.pallas_call(
        functools.partial(hlfae_kernel, seg_len=L, dim=C),
        out_shape=jax.ShapeDtypeStruct((NG, C, GL), jnp.float32),
        grid=(NG,),
        in_specs=[pl.BlockSpec((1, C, GL), lambda n: (n, 0, 0))]
                 + [rep(a) for a in args[1:]],
        out_specs=pl.BlockSpec((1, C, GL), lambda n: (n, 0, 0)),
        compiler_params=pltpu.CompilerParams(dimension_semantics=("parallel",)),
    )(*args)

    out = out.reshape(NG, C, G, L).transpose(0, 2, 1, 3).reshape(Bp, C, L)[:B]
    return out[..., None]                         # (B, C, L, 1)


# ----------------------------------------------------------------------------
# deterministic parameter construction (raw torch-layout + kernel-folded)
# ----------------------------------------------------------------------------
def make_params(key, C, L, G, tap_dtype):
    L2 = L // 2
    Cr = max(C // RATIO, 1)
    Cse = max(C // SE_RED, 1)
    keys = iter(jax.random.split(key, 64))

    def normal(shape, std=0.1):
        return (std * jax.random.normal(next(keys), shape)).astype(jnp.float32)

    def bn_params(c):
        gamma = (1.0 + 0.1 * jax.random.normal(next(keys), (c,))).astype(jnp.float32)
        beta = (0.1 * jax.random.normal(next(keys), (c,))).astype(jnp.float32)
        mean = (0.1 * jax.random.normal(next(keys), (c,))).astype(jnp.float32)
        var = jax.random.uniform(next(keys), (c,), minval=0.5, maxval=1.5).astype(jnp.float32)
        return (gamma, beta, mean, var)

    # raw (PyTorch-layout) parameters — used by the pure-JAX reference
    wd = [normal((C, C, 3)) for _ in range(4)]
    bd = [normal((C,)) for _ in range(4)]
    bnd = [bn_params(C) for _ in range(4)]
    wm1 = normal((2 * C, 4 * C, 3)); bm1 = normal((2 * C,)); bnm1 = bn_params(2 * C)
    wm2 = normal((C, 2 * C, 1)); bm2 = normal((C,)); bnm2 = bn_params(C)
    wc = normal((C, 2 * C, 3)); bnc = bn_params(C)        # CBR conv, bias=False
    wf1 = normal((Cr, C, 1)); wf2 = normal((C, Cr, 1))    # fc1/fc2, bias=False
    ws1 = normal((Cse, C)); ws2 = normal((C, Cse))        # SE linears, bias=False

    raw = dict(wd=wd, bd=bd, bnd=bnd, wm1=wm1, bm1=bm1, bnm1=bnm1,
               wm2=wm2, bm2=bm2, bnm2=bnm2, wc=wc, bnc=bnc,
               wf1=wf1, wf2=wf2, ws1=ws1, ws2=ws2)

    # ---- kernel-side folded / packed parameters (fold in f32, cast ONCE) ----
    cdt = MATMUL_DTYPE
    kd = {}

    def fold(bn, conv_bias=None):
        g, b, mu, var = [np.asarray(t, np.float32) for t in bn]
        scale = g / np.sqrt(var + EPS)
        cb = np.zeros_like(mu) if conv_bias is None else np.asarray(conv_bias, np.float32)
        shift = scale * (cb - mu) + b
        return scale, shift

    # 4 dilated branches fused into one (4C, NOFF*C) weight, BN scale folded
    # into the rows; column block r multiplies the copy of `high` shifted by
    # OFFSETS[r].
    wdil = np.zeros((4 * C, NUM_OFFSETS * C), np.float32)
    bdil = np.zeros((4 * C,), np.float32)
    for di, d in enumerate(DILATIONS):
        w = np.asarray(wd[di])                              # (Cout, Cin, 3)
        scale, shift = fold(bnd[di], bd[di])
        for k, o in ((0, -d), (1, 0), (2, d)):
            r = OFFSETS.index(o)
            wdil[di * C:(di + 1) * C, r * C:(r + 1) * C] = scale[:, None] * w[:, :, k]
        bdil[di * C:(di + 1) * C] = shift
    kd['wdil'] = jnp.asarray(wdil, cdt)

    # convmlp conv1 (k3, dil 1): taps stacked in offset order (0, -1, +1)
    s1, sh1 = fold(bnm1, bm1)
    wm1_np = np.asarray(wm1)
    kd['wm1'] = jnp.asarray(s1[:, None] * np.concatenate(
        [wm1_np[:, :, 1], wm1_np[:, :, 0], wm1_np[:, :, 2]], axis=1), cdt)

    s2, sh2 = fold(bnm2, bm2)
    kd['wm2'] = jnp.asarray(s2[:, None] * np.asarray(wm2)[:, :, 0], cdt)   # (C, 2C)

    # CBR conv (k3, dil 1, bias=False)
    sc, shc = fold(bnc, None)
    wc_np = np.asarray(wc)
    kd['wcbr'] = jnp.asarray(sc[:, None] * np.concatenate(
        [wc_np[:, :, 1], wc_np[:, :, 0], wc_np[:, :, 2]], axis=1), cdt)

    # all post-conv BN-folded biases packed into ONE (8C, 1) f32 column:
    # rows [0,4C)=dilated branches, [4C,6C)=convmlp k3, [6C,7C)=convmlp k1,
    # [7C,8C)=CBR.
    kd['bias'] = jnp.asarray(
        np.concatenate([bdil, sh1, sh2, shc])[:, None], jnp.float32)

    # channel-attention fc path (block-diag fc1 over avg/max, tiled fc2) and
    # SE linears, zero-padded to (C, ...) so the chains need no in-kernel
    # slicing (padding rows/cols contribute exact zeros through the ReLUs).
    wf1_np = np.asarray(wf1)[:, :, 0]
    wf2_np = np.asarray(wf2)[:, :, 0]
    wf1p = np.zeros((C, 2 * C), np.float32)
    wf1p[:Cr, :C] = wf1_np
    wf1p[Cr:2 * Cr, C:] = wf1_np
    kd['wf1'] = jnp.asarray(wf1p)                           # (C, 2C)

    fcs = np.zeros((3, C, C), np.float32)                   # [fc2 tiled | SE fc1 | SE fc2]
    fcs[0, :, :Cr] = wf2_np
    fcs[0, :, Cr:2 * Cr] = wf2_np
    fcs[1, :Cse, :] = np.asarray(ws1)
    fcs[2, :, :Cse] = np.asarray(ws2)
    kd['fcs'] = jnp.asarray(fcs)                            # (3, C, C)

    # structural (per-segment block-diagonal) matrices
    # TODO(synk): PU is dense (GL, GL); switch to a roll-based pool+lerp for
    # large L (O(GL^2) VMEM and multi-pass f32 MXU work otherwise).
    PU = avgpool_matrix(L) @ linear_interp_matrix(L2, L)    # (L, L) pool+upsample
    kd['pu'] = jnp.asarray(block_diag(PU, G))               # (GL, GL)
    avgseg = block_diag(np.full((L, 1), 1.0 / L, np.float32), G)
    sel = np.zeros((L, 1), np.float32); sel[0, 0] = 1.0
    kd['avgsel'] = jnp.asarray(np.stack([avgseg, block_diag(sel, G)]))  # (2, GL, G)
    kd['bcast'] = jnp.asarray(block_diag(np.ones((1, L), np.float32), G))  # (G, GL)
    kd['mask'] = jnp.asarray(offset_masks(L, G), tap_dtype)  # (NOFF, 1, GL)
    return raw, kd


# ----------------------------------------------------------------------------
# pure-JAX reference (eval-mode BN), used only as a sanity check
# ----------------------------------------------------------------------------
def ref_forward(x, raw, C, L):
    relu = lambda v: jnp.maximum(v, 0.0)
    sig = lambda v: 1.0 / (1.0 + jnp.exp(-v))
    HI = lax.Precision.HIGHEST

    def conv1d(h, w, b, dilation, padding):
        out = lax.conv_general_dilated(
            h, w, window_strides=(1,), padding=[(padding, padding)],
            rhs_dilation=(dilation,), dimension_numbers=('NCH', 'OIH', 'NCH'),
            precision=HI)
        if b is not None:
            out = out + b[None, :, None]
        return out

    def bn(h, p):
        g, be, mu, var = p
        return (h - mu[None, :, None]) * (g / jnp.sqrt(var + EPS))[None, :, None] + be[None, :, None]

    def interp(h, Lout):
        Lin = h.shape[-1]
        ratio = Lin / Lout
        i = np.arange(Lout)
        s = np.maximum(ratio * (i + 0.5) - 0.5, 0.0)
        i0 = np.minimum(np.floor(s).astype(np.int64), Lin - 1)
        i1 = np.minimum(i0 + 1, Lin - 1)
        w1 = jnp.asarray(s - i0, jnp.float32)
        return h[..., i0] * (1.0 - w1) + h[..., i1] * w1

    B = x.shape[0]
    low = x.reshape(B, C, L // 2, 2).mean(-1)
    high = x - interp(low, L)
    outs = []
    for i, d in enumerate(DILATIONS):
        outs.append(relu(bn(conv1d(high, raw['wd'][i], raw['bd'][i], d, d), raw['bnd'][i])))
    cat = jnp.concatenate(outs, axis=1)
    h = relu(bn(conv1d(cat, raw['wm1'], raw['bm1'], 1, 1), raw['bnm1']))
    high_out = relu(bn(conv1d(h, raw['wm2'], raw['bm2'], 1, 0), raw['bnm2']))

    avg_v = jnp.mean(low, axis=-1, keepdims=True)
    max_v = jnp.max(low, axis=-1, keepdims=True)

    def fc_path(v):
        return conv1d(relu(conv1d(v, raw['wf1'], None, 1, 0)), raw['wf2'], None, 1, 0)

    gate = sig(fc_path(avg_v) + fc_path(max_v))
    low_up = interp(low * gate, L)

    out = jnp.concatenate([high_out, low_up], axis=1)
    y = relu(bn(conv1d(out, raw['wc'], None, 1, 1), raw['bnc']))
    se = jnp.mean(y, axis=-1)                                     # (B, C)
    z = sig(jnp.dot(relu(jnp.dot(se, raw['ws1'].T, precision=HI)),
                    raw['ws2'].T, precision=HI))                  # (B, C)
    return y * z[:, :, None] + x


# ----------------------------------------------------------------------------
if __name__ == "__main__":
    B, C, L = 16, DIM, 16
    key = jax.random.PRNGKey(0)
    kx, kp = jax.random.split(key)
    x = jax.random.normal(kx, (B, C, L, 1), jnp.float32)

    G = choose_group(L, B)              # 8 (GL=128) or 16 (GL=256) by device
    tap_dtype = tap_dtype_for_device()  # bf16 tap path on v6e/v7x, f32 otherwise
    raw, kd = make_params(kp, C, L, G, tap_dtype)

    out = jax.block_until_ready(hlfae_forward(x, kd, G))
    assert out.shape == x.shape

    ref = ref_forward(x[..., 0], raw, C, L)[..., None]
    err = float(jnp.max(jnp.abs(out - ref)))
    # bf16 MXU operands trade a couple of mantissa bits for throughput; with
    # MATMUL_DTYPE = jnp.float32 the kernel matches the reference to 1e-2.
    tol = 1e-2 if MATMUL_DTYPE == jnp.float32 else 5e-2
    assert err < tol, f"kernel/reference mismatch, max abs err = {err}"

    print("KERNEL_OK")
</pallas_src>

<mosaic_0001>
module attributes {stable_mosaic.version = 11 : i64} {
  func.func @hlfae_kernel(%arg0: i32, %arg1: memref<1x32x128xf32, #tpu.memory_space<vmem>>, %arg2: memref<128x128xf32, #tpu.memory_space<vmem>>, %arg3: memref<2x128x8xf32, #tpu.memory_space<vmem>>, %arg4: memref<8x128xf32, #tpu.memory_space<vmem>>, %arg5: memref<9x1x128xf32, #tpu.memory_space<vmem>>, %arg6: memref<256x1xf32, #tpu.memory_space<vmem>>, %arg7: memref<128x288xbf16, #tpu.memory_space<vmem>>, %arg8: memref<64x384xbf16, #tpu.memory_space<vmem>>, %arg9: memref<32x64xbf16, #tpu.memory_space<vmem>>, %arg10: memref<32x192xbf16, #tpu.memory_space<vmem>>, %arg11: memref<32x64xf32, #tpu.memory_space<vmem>>, %arg12: memref<3x32x32xf32, #tpu.memory_space<vmem>>, %arg13: memref<1x32x128xf32, #tpu.memory_space<vmem>>) attributes {dimension_semantics = [#tpu.dimension_semantics<parallel>], iteration_bounds = array<i64: 2>, scalar_prefetch = 0 : i64, scratch_operands = 0 : i64, tpu.core_type = #tpu.core_type<tc>, window_params = [{transform_indices = @transform_0, window_bounds = array<i64: 1, 32, 128>}, {pipeline_mode = #tpu.pipeline_mode<synchronous>, transform_indices = @transform_1, window_bounds = array<i64: 128, 128>}, {pipeline_mode = #tpu.pipeline_mode<synchronous>, transform_indices = @transform_2, window_bounds = array<i64: 2, 128, 8>}, {pipeline_mode = #tpu.pipeline_mode<synchronous>, transform_indices = @transform_3, window_bounds = array<i64: 8, 128>}, {pipeline_mode = #tpu.pipeline_mode<synchronous>, transform_indices = @transform_4, window_bounds = array<i64: 9, 1, 128>}, {pipeline_mode = #tpu.pipeline_mode<synchronous>, transform_indices = @transform_5, window_bounds = array<i64: 256, 1>}, {pipeline_mode = #tpu.pipeline_mode<synchronous>, transform_indices = @transform_6, window_bounds = array<i64: 128, 288>}, {pipeline_mode = #tpu.pipeline_mode<synchronous>, transform_indices = @transform_7, window_bounds = array<i64: 64, 384>}, {pipeline_mode = #tpu.pipeline_mode<synchronous>, transform_indices = @transform_8, window_bounds = array<i64: 32, 64>}, {pipeline_mode = #tpu.pipeline_mode<synchronous>, transform_indices = @transform_9, window_bounds = array<i64: 32, 192>}, {pipeline_mode = #tpu.pipeline_mode<synchronous>, transform_indices = @transform_10, window_bounds = array<i64: 32, 64>}, {pipeline_mode = #tpu.pipeline_mode<synchronous>, transform_indices = @transform_11, window_bounds = array<i64: 3, 32, 32>}, {transform_indices = @transform_12, window_bounds = array<i64: 1, 32, 128>}]} {
    %c0 = arith.constant 0 : index
    %c0_0 = arith.constant 0 : index
    %c0_1 = arith.constant 0 : index
    %0 = vector.load %arg1[%c0, %c0_0, %c0_1] : memref<1x32x128xf32, #tpu.memory_space<vmem>>, vector<1x32x128xf32>
    %1 = vector.shape_cast %0 : vector<1x32x128xf32> to vector<32x128xf32>
    %c0_2 = arith.constant 0 : index
    %c0_3 = arith.constant 0 : index
    %2 = vector.load %arg2[%c0_2, %c0_3] : memref<128x128xf32, #tpu.memory_space<vmem>>, vector<128x128xf32>
    %cst = arith.constant dense<0.000000e+00> : vector<32x128xf32>
    %3 = tpu.matmul %1, %2, %cst {dimension_numbers = #tpu.dot_dimension_numbers<[1], [0], [0], [1], [0, 0, 1, 1], [], []>} : vector<32x128xf32>, vector<128x128xf32>, vector<32x128xf32> -> vector<32x128xf32>
    %4 = arith.subf %1, %3 : vector<32x128xf32>
    %c1_i32 = arith.constant 1 : i32
    %5 = tpu.dynamic_rotate %4 by %c1_i32 dim 1 : vector<32x128xf32>, i32 -> vector<32x128xf32>
    %c1 = arith.constant 1 : index
    %c0_4 = arith.constant 0 : index
    %c0_5 = arith.constant 0 : index
    %6 = vector.load %arg5[%c1, %c0_4, %c0_5] : memref<9x1x128xf32, #tpu.memory_space<vmem>>, vector<1x1x128xf32>
    %7 = vector.shape_cast %6 : vector<1x1x128xf32> to vector<1x128xf32>
    %8 = vector.broadcast %7 : vector<1x128xf32> to vector<32x128xf32>
    %9 = arith.mulf %5, %8 : vector<32x128xf32>
    %c127_i32 = arith.constant 127 : i32
    %10 = tpu.dynamic_rotate %4 by %c127_i32 dim 1 : vector<32x128xf32>, i32 -> vector<32x128xf32>
    %c2 = arith.constant 2 : index
    %c0_6 = arith.constant 0 : index
    %c0_7 = arith.constant 0 : index
    %11 = vector.load %arg5[%c2, %c0_6, %c0_7] : memref<9x1x128xf32, #tpu.memory_space<vmem>>, vector<1x1x128xf32>
    %12 = vector.shape_cast %11 : vector<1x1x128xf32> to vector<1x128xf32>
    %13 = vector.broadcast %12 : vector<1x128xf32> to vector<32x128xf32>
    %14 = arith.mulf %10, %13 : vector<32x128xf32>
    %c3_i32 = arith.constant 3 : i32
    %15 = tpu.dynamic_rotate %4 by %c3_i32 dim 1 : vector<32x128xf32>, i32 -> vector<32x128xf32>
    %c3 = arith.constant 3 : index
    %c0_8 = arith.constant 0 : index
    %c0_9 = arith.constant 0 : index
    %16 = vector.load %arg5[%c3, %c0_8, %c0_9] : memref<9x1x128xf32, #tpu.memory_space<vmem>>, vector<1x1x128xf32>
    %17 = vector.shape_cast %16 : vector<1x1x128xf32> to vector<1x128xf32>
    %18 = vector.broadcast %17 : vector<1x128xf32> to vector<32x128xf32>
    %19 = arith.mulf %15, %18 : vector<32x128xf32>
    %c125_i32 = arith.constant 125 : i32
    %20 = tpu.dynamic_rotate %4 by %c125_i32 dim 1 : vector<32x128xf32>, i32 -> vector<32x128xf32>
    %c4 = arith.constant 4 : index
    %c0_10 = arith.constant 0 : index
    %c0_11 = arith.constant 0 : index
    %21 = vector.load %arg5[%c4, %c0_10, %c0_11] : memref<9x1x128xf32, #tpu.memory_space<vmem>>, vector<1x1x128xf32>
    %22 = vector.shape_cast %21 : vector<1x1x128xf32> to vector<1x128xf32>
    %23 = vector.broadcast %22 : vector<1x128xf32> to vector<32x128xf32>
    %24 = arith.mulf %20, %23 : vector<32x128xf32>
    %c5_i32 = arith.constant 5 : i32
    %25 = tpu.dynamic_rotate %4 by %c5_i32 dim 1 : vector<32x128xf32>, i32 -> vector<32x128xf32>
    %c5 = arith.constant 5 : index
    %c0_12 = arith.constant 0 : index
    %c0_13 = arith.constant 0 : index
    %26 = vector.load %arg5[%c5, %c0_12, %c0_13] : memref<9x1x128xf32, #tpu.memory_space<vmem>>, vector<1x1x128xf32>
    %27 = vector.shape_cast %26 : vector<1x1x128xf32> to vector<1x128xf32>
    %28 = vector.broadcast %27 : vector<1x128xf32> to vector<32x128xf32>
    %29 = arith.mulf %25, %28 : vector<32x128xf32>
    %c123_i32 = arith.constant 123 : i32
    %30 = tpu.dynamic_rotate %4 by %c123_i32 dim 1 : vector<32x128xf32>, i32 -> vector<32x128xf32>
    %c6 = arith.constant 6 : index
    %c0_14 = arith.constant 0 : index
    %c0_15 = arith.constant 0 : index
    %31 = vector.load %arg5[%c6, %c0_14, %c0_15] : memref<9x1x128xf32, #tpu.memory_space<vmem>>, vector<1x1x128xf32>
    %32 = vector.shape_cast %31 : vector<1x1x128xf32> to vector<1x128xf32>
    %33 = vector.broadcast %32 : vector<1x128xf32> to vector<32x128xf32>
    %34 = arith.mulf %30, %33 : vector<32x128xf32>
    %c7_i32 = arith.constant 7 : i32
    %35 = tpu.dynamic_rotate %4 by %c7_i32 dim 1 : vector<32x128xf32>, i32 -> vector<32x128xf32>
    %c7 = arith.constant 7 : index
    %c0_16 = arith.constant 0 : index
    %c0_17 = arith.constant 0 : index
    %36 = vector.load %arg5[%c7, %c0_16, %c0_17] : memref<9x1x128xf32, #tpu.memory_space<vmem>>, vector<1x1x128xf32>
    %37 = vector.shape_cast %36 : vector<1x1x128xf32> to vector<1x128xf32>
    %38 = vector.broadcast %37 : vector<1x128xf32> to vector<32x128xf32>
    %39 = arith.mulf %35, %38 : vector<32x128xf32>
    %c121_i32 = arith.constant 121 : i32
    %40 = tpu.dynamic_rotate %4 by %c121_i32 dim 1 : vector<32x128xf32>, i32 -> vector<32x128xf32>
    %c8 = arith.constant 8 : index
    %c0_18 = arith.constant 0 : index
    %c0_19 = arith.constant 0 : index
    %41 = vector.load %arg5[%c8, %c0_18, %c0_19] : memref<9x1x128xf32, #tpu.memory_space<vmem>>, vector<1x1x128xf32>
    %42 = vector.shape_cast %41 : vector<1x1x128xf32> to vector<1x128xf32>
    %43 = vector.broadcast %42 : vector<1x128xf32> to vector<32x128xf32>
    %44 = arith.mulf %40, %43 : vector<32x128xf32>
    %45 = tpu.concatenate %4, %9, %14, %19, %24, %29, %34, %39, %44 in 0 : vector<32x128xf32>, vector<32x128xf32>, vector<32x128xf32>, vector<32x128xf32>, vector<32x128xf32>, vector<32x128xf32>, vector<32x128xf32>, vector<32x128xf32>, vector<32x128xf32> -> vector<288x128xf32>
    %c0_20 = arith.constant 0 : index
    %c0_21 = arith.constant 0 : index
    %46 = vector.load %arg7[%c0_20, %c0_21] : memref<128x288xbf16, #tpu.memory_space<vmem>>, vector<128x288xbf16>
    %47 = arith.truncf %45 : vector<288x128xf32> to vector<288x128xbf16>
    %cst_22 = arith.constant dense<0.000000e+00> : vector<128x128xf32>
    %48 = tpu.matmul %46, %47, %cst_22 {dimension_numbers = #tpu.dot_dimension_numbers<[1], [0], [0], [1], [0, 0, 1, 1], [], []>} : vector<128x288xbf16>, vector<288x128xbf16>, vector<128x128xf32> -> vector<128x128xf32>
    %c0_23 = arith.constant 0 : index
    %c0_24 = arith.constant 0 : index
    %49 = vector.load %arg6[%c0_23, %c0_24] : memref<256x1xf32, #tpu.memory_space<vmem>>, vector<128x1xf32>
    %50 = vector.broadcast %49 : vector<128x1xf32> to vector<128x128xf32>
    %51 = arith.addf %48, %50 : vector<128x128xf32>
    %cst_25 = arith.constant 0.000000e+00 : f32
    %52 = vector.broadcast %cst_25 : f32 to vector<128x128xf32>
    %53 = arith.maximumf %51, %52 : vector<128x128xf32>
    %c1_i32_26 = arith.constant 1 : i32
    %54 = tpu.dynamic_rotate %53 by %c1_i32_26 dim 1 : vector<128x128xf32>, i32 -> vector<128x128xf32>
    %c1_27 = arith.constant 1 : index
    %c0_28 = arith.constant 0 : index
    %c0_29 = arith.constant 0 : index
    %55 = vector.load %arg5[%c1_27, %c0_28, %c0_29] : memref<9x1x128xf32, #tpu.memory_space<vmem>>, vector<1x1x128xf32>
    %56 = vector.shape_cast %55 : vector<1x1x128xf32> to vector<1x128xf32>
    %57 = vector.broadcast %56 : vector<1x128xf32> to vector<128x128xf32>
    %58 = arith.mulf %54, %57 : vector<128x128xf32>
    %c127_i32_30 = arith.constant 127 : i32
    %59 = tpu.dynamic_rotate %53 by %c127_i32_30 dim 1 : vector<128x128xf32>, i32 -> vector<128x128xf32>
    %c2_31 = arith.constant 2 : index
    %c0_32 = arith.constant 0 : index
    %c0_33 = arith.constant 0 : index
    %60 = vector.load %arg5[%c2_31, %c0_32, %c0_33] : memref<9x1x128xf32, #tpu.memory_space<vmem>>, vector<1x1x128xf32>
    %61 = vector.shape_cast %60 : vector<1x1x128xf32> to vector<1x128xf32>
    %62 = vector.broadcast %61 : vector<1x128xf32> to vector<128x128xf32>
    %63 = arith.mulf %59, %62 : vector<128x128xf32>
    %64 = tpu.concatenate %53, %58, %63 in 0 : vector<128x128xf32>, vector<128x128xf32>, vector<128x128xf32> -> vector<384x128xf32>
    %c0_34 = arith.constant 0 : index
    %c0_35 = arith.constant 0 : index
    %65 = vector.load %arg8[%c0_34, %c0_35] : memref<64x384xbf16, #tpu.memory_space<vmem>>, vector<64x384xbf16>
    %66 = arith.truncf %64 : vector<384x128xf32> to vector<384x128xbf16>
    %cst_36 = arith.constant dense<0.000000e+00> : vector<64x128xf32>
    %67 = tpu.matmul %65, %66, %cst_36 {dimension_numbers = #tpu.dot_dimension_numbers<[1], [0], [0], [1], [0, 0, 1, 1], [], []>} : vector<64x384xbf16>, vector<384x128xbf16>, vector<64x128xf32> -> vector<64x128xf32>
    %c128 = arith.constant 128 : index
    %c0_37 = arith.constant 0 : index
    %68 = vector.load %arg6[%c128, %c0_37] : memref<256x1xf32, #tpu.memory_space<vmem>>, vector<64x1xf32>
    %69 = vector.broadcast %68 : vector<64x1xf32> to vector<64x128xf32>
    %70 = arith.addf %67, %69 : vector<64x128xf32>
    %cst_38 = arith.constant 0.000000e+00 : f32
    %71 = vector.broadcast %cst_38 : f32 to vector<64x128xf32>
    %72 = arith.maximumf %70, %71 : vector<64x128xf32>
    %c0_39 = arith.constant 0 : index
    %c0_40 = arith.constant 0 : index
    %73 = vector.load %arg9[%c0_39, %c0_40] : memref<32x64xbf16, #tpu.memory_space<vmem>>, vector<32x64xbf16>
    %74 = arith.truncf %72 : vector<64x128xf32> to vector<64x128xbf16>
    %cst_41 = arith.constant dense<0.000000e+00> : vector<32x128xf32>
    %75 = tpu.matmul %73, %74, %cst_41 {dimension_numbers = #tpu.dot_dimension_numbers<[1], [0], [0], [1], [0, 0, 1, 1], [], []>} : vector<32x64xbf16>, vector<64x128xbf16>, vector<32x128xf32> -> vector<32x128xf32>
    %c192 = arith.constant 192 : index
    %c0_42 = arith.constant 0 : index
    %76 = vector.load %arg6[%c192, %c0_42] : memref<256x1xf32, #tpu.memory_space<vmem>>, vector<32x1xf32>
    %77 = vector.broadcast %76 : vector<32x1xf32> to vector<32x128xf32>
    %78 = arith.addf %75, %77 : vector<32x128xf32>
    %cst_43 = arith.constant 0.000000e+00 : f32
    %79 = vector.broadcast %cst_43 : f32 to vector<32x128xf32>
    %80 = arith.maximumf %78, %79 : vector<32x128xf32>
    %c0_44 = arith.constant 0 : index
    %c0_45 = arith.constant 0 : index
    %c0_46 = arith.constant 0 : index
    %81 = vector.load %arg3[%c0_44, %c0_45, %c0_46] : memref<2x128x8xf32, #tpu.memory_space<vmem>>, vector<1x128x8xf32>
    %82 = vector.shape_cast %81 : vector<1x128x8xf32> to vector<128x8xf32>
    %cst_47 = arith.constant dense<0.000000e+00> : vector<32x8xf32>
    %83 = tpu.matmul %1, %82, %cst_47 {dimension_numbers = #tpu.dot_dimension_numbers<[1], [0], [0], [1], [0, 0, 1, 1], [], []>} : vector<32x128xf32>, vector<128x8xf32>, vector<32x8xf32> -> vector<32x8xf32>
    %c127_i32_48 = arith.constant 127 : i32
    %84 = tpu.dynamic_rotate %1 by %c127_i32_48 dim 1 : vector<32x128xf32>, i32 -> vector<32x128xf32>
    %85 = arith.addf %1, %84 : vector<32x128xf32>
    %cst_49 = arith.constant 5.000000e-01 : f32
    %86 = vector.broadcast %cst_49 : f32 to vector<32x128xf32>
    %87 = arith.mulf %86, %85 : vector<32x128xf32>
    %c126_i32 = arith.constant 126 : i32
    %88 = tpu.dynamic_rotate %87 by %c126_i32 dim 1 : vector<32x128xf32>, i32 -> vector<32x128xf32>
    %89 = arith.maximumf %87, %88 : vector<32x128xf32>
    %c124_i32 = arith.constant 124 : i32
    %90 = tpu.dynamic_rotate %89 by %c124_i32 dim 1 : vector<32x128xf32>, i32 -> vector<32x128xf32>
    %91 = arith.maximumf %89, %90 : vector<32x128xf32>
    %c120_i32 = arith.constant 120 : i32
    %92 = tpu.dynamic_rotate %91 by %c120_i32 dim 1 : vector<32x128xf32>, i32 -> vector<32x128xf32>
    %93 = arith.maximumf %91, %92 : vector<32x128xf32>
    %c1_50 = arith.constant 1 : index
    %c0_51 = arith.constant 0 : index
    %c0_52 = arith.constant 0 : index
    %94 = vector.load %arg3[%c1_50, %c0_51, %c0_52] : memref<2x128x8xf32, #tpu.memory_space<vmem>>, vector<1x128x8xf32>
    %95 = vector.shape_cast %94 : vector<1x128x8xf32> to vector<128x8xf32>
    %cst_53 = arith.constant dense<0.000000e+00> : vector<32x8xf32>
    %96 = tpu.matmul %93, %95, %cst_53 {dimension_numbers = #tpu.dot_dimension_numbers<[1], [0], [0], [1], [0, 0, 1, 1], [], []>} : vector<32x128xf32>, vector<128x8xf32>, vector<32x8xf32> -> vector<32x8xf32>
    %97 = tpu.concatenate %83, %96 in 0 : vector<32x8xf32>, vector<32x8xf32> -> vector<64x8xf32>
    %c0_54 = arith.constant 0 : index
    %c0_55 = arith.constant 0 : index
    %c0_56 = arith.constant 0 : index
    %98 = vector.load %arg12[%c0_54, %c0_55, %c0_56] : memref<3x32x32xf32, #tpu.memory_space<vmem>>, vector<1x32x32xf32>
    %99 = vector.shape_cast %98 : vector<1x32x32xf32> to vector<32x32xf32>
    %c0_57 = arith.constant 0 : index
    %c0_58 = arith.constant 0 : index
    %100 = vector.load %arg11[%c0_57, %c0_58] : memref<32x64xf32, #tpu.memory_space<vmem>>, vector<32x64xf32>
    %cst_59 = arith.constant dense<0.000000e+00> : vector<32x8xf32>
    %101 = tpu.matmul %100, %97, %cst_59 {dimension_numbers = #tpu.dot_dimension_numbers<[1], [0], [0], [1], [0, 0, 1, 1], [], []>} : vector<32x64xf32>, vector<64x8xf32>, vector<32x8xf32> -> vector<32x8xf32>
    %cst_60 = arith.constant 0.000000e+00 : f32
    %102 = vector.broadcast %cst_60 : f32 to vector<32x8xf32>
    %103 = arith.maximumf %101, %102 : vector<32x8xf32>
    %cst_61 = arith.constant dense<0.000000e+00> : vector<32x8xf32>
    %104 = tpu.matmul %99, %103, %cst_61 {dimension_numbers = #tpu.dot_dimension_numbers<[1], [0], [0], [1], [0, 0, 1, 1], [], []>} : vector<32x32xf32>, vector<32x8xf32>, vector<32x8xf32> -> vector<32x8xf32>
    %cst_62 = arith.constant 0.000000e+00 : f32
    %105 = vector.broadcast %cst_62 : f32 to vector<32x8xf32>
    %106 = arith.subf %105, %104 : vector<32x8xf32>
    %107 = math.exp %106 : vector<32x8xf32>
    %cst_63 = arith.constant 1.000000e+00 : f32
    %108 = vector.broadcast %cst_63 : f32 to vector<32x8xf32>
    %109 = arith.addf %108, %107 : vector<32x8xf32>
    %110 = tpu.reciprocal %109 {approx = true} : vector<32x8xf32> -> vector<32x8xf32>
    %c0_64 = arith.constant 0 : index
    %c0_65 = arith.constant 0 : index
    %111 = vector.load %arg4[%c0_64, %c0_65] : memref<8x128xf32, #tpu.memory_space<vmem>>, vector<8x128xf32>
    %cst_66 = arith.constant dense<0.000000e+00> : vector<32x128xf32>
    %112 = tpu.matmul %110, %111, %cst_66 {dimension_numbers = #tpu.dot_dimension_numbers<[1], [0], [0], [1], [0, 0, 1, 1], [], []>} : vector<32x8xf32>, vector<8x128xf32>, vector<32x128xf32> -> vector<32x128xf32>
    %113 = arith.mulf %3, %112 : vector<32x128xf32>
    %114 = tpu.concatenate %80, %113 in 0 : vector<32x128xf32>, vector<32x128xf32> -> vector<64x128xf32>
    %c1_i32_67 = arith.constant 1 : i32
    %115 = tpu.dynamic_rotate %114 by %c1_i32_67 dim 1 : vector<64x128xf32>, i32 -> vector<64x128xf32>
    %c1_68 = arith.constant 1 : index
    %c0_69 = arith.constant 0 : index
    %c0_70 = arith.constant 0 : index
    %116 = vector.load %arg5[%c1_68, %c0_69, %c0_70] : memref<9x1x128xf32, #tpu.memory_space<vmem>>, vector<1x1x128xf32>
    %117 = vector.shape_cast %116 : vector<1x1x128xf32> to vector<1x128xf32>
    %118 = vector.broadcast %117 : vector<1x128xf32> to vector<64x128xf32>
    %119 = arith.mulf %115, %118 : vector<64x128xf32>
    %c127_i32_71 = arith.constant 127 : i32
    %120 = tpu.dynamic_rotate %114 by %c127_i32_71 dim 1 : vector<64x128xf32>, i32 -> vector<64x128xf32>
    %c2_72 = arith.constant 2 : index
    %c0_73 = arith.constant 0 : index
    %c0_74 = arith.constant 0 : index
    %121 = vector.load %arg5[%c2_72, %c0_73, %c0_74] : memref<9x1x128xf32, #tpu.memory_space<vmem>>, vector<1x1x128xf32>
    %122 = vector.shape_cast %121 : vector<1x1x128xf32> to vector<1x128xf32>
    %123 = vector.broadcast %122 : vector<1x128xf32> to vector<64x128xf32>
    %124 = arith.mulf %120, %123 : vector<64x128xf32>
    %125 = tpu.concatenate %114, %119, %124 in 0 : vector<64x128xf32>, vector<64x128xf32>, vector<64x128xf32> -> vector<192x128xf32>
    %c0_75 = arith.constant 0 : index
    %c0_76 = arith.constant 0 : index
    %126 = vector.load %arg10[%c0_75, %c0_76] : memref<32x192xbf16, #tpu.memory_space<vmem>>, vector<32x192xbf16>
    %127 = arith.truncf %125 : vector<192x128xf32> to vector<192x128xbf16>
    %cst_77 = arith.constant dense<0.000000e+00> : vector<32x128xf32>
    %128 = tpu.matmul %126, %127, %cst_77 {dimension_numbers = #tpu.dot_dimension_numbers<[1], [0], [0], [1], [0, 0, 1, 1], [], []>} : vector<32x192xbf16>, vector<192x128xbf16>, vector<32x128xf32> -> vector<32x128xf32>
    %c224 = arith.constant 224 : index
    %c0_78 = arith.constant 0 : index
    %129 = vector.load %arg6[%c224, %c0_78] : memref<256x1xf32, #tpu.memory_space<vmem>>, vector<32x1xf32>
    %130 = vector.broadcast %129 : vector<32x1xf32> to vector<32x128xf32>
    %131 = arith.addf %128, %130 : vector<32x128xf32>
    %cst_79 = arith.constant 0.000000e+00 : f32
    %132 = vector.broadcast %cst_79 : f32 to vector<32x128xf32>
    %133 = arith.maximumf %131, %132 : vector<32x128xf32>
    %c0_80 = arith.constant 0 : index
    %c0_81 = arith.constant 0 : index
    %c0_82 = arith.constant 0 : index
    %134 = vector.load %arg3[%c0_80, %c0_81, %c0_82] : memref<2x128x8xf32, #tpu.memory_space<vmem>>, vector<1x128x8xf32>
    %135 = vector.shape_cast %134 : vector<1x128x8xf32> to vector<128x8xf32>
    %cst_83 = arith.constant dense<0.000000e+00> : vector<32x8xf32>
    %136 = tpu.matmul %133, %135, %cst_83 {dimension_numbers = #tpu.dot_dimension_numbers<[1], [0], [0], [1], [0, 0, 1, 1], [], []>} : vector<32x128xf32>, vector<128x8xf32>, vector<32x8xf32> -> vector<32x8xf32>
    %c2_84 = arith.constant 2 : index
    %c0_85 = arith.constant 0 : index
    %c0_86 = arith.constant 0 : index
    %137 = vector.load %arg12[%c2_84, %c0_85, %c0_86] : memref<3x32x32xf32, #tpu.memory_space<vmem>>, vector<1x32x32xf32>
    %138 = vector.shape_cast %137 : vector<1x32x32xf32> to vector<32x32xf32>
    %c1_87 = arith.constant 1 : index
    %c0_88 = arith.constant 0 : index
    %c0_89 = arith.constant 0 : index
    %139 = vector.load %arg12[%c1_87, %c0_88, %c0_89] : memref<3x32x32xf32, #tpu.memory_space<vmem>>, vector<1x32x32xf32>
    %140 = vector.shape_cast %139 : vector<1x32x32xf32> to vector<32x32xf32>
    %cst_90 = arith.constant dense<0.000000e+00> : vector<32x8xf32>
    %141 = tpu.matmul %140, %136, %cst_90 {dimension_numbers = #tpu.dot_dimension_numbers<[1], [0], [0], [1], [0, 0, 1, 1], [], []>} : vector<32x32xf32>, vector<32x8xf32>, vector<32x8xf32> -> vector<32x8xf32>
    %cst_91 = arith.constant 0.000000e+00 : f32
    %142 = vector.broadcast %cst_91 : f32 to vector<32x8xf32>
    %143 = arith.maximumf %141, %142 : vector<32x8xf32>
    %cst_92 = arith.constant dense<0.000000e+00> : vector<32x8xf32>
    %144 = tpu.matmul %138, %143, %cst_92 {dimension_numbers = #tpu.dot_dimension_numbers<[1], [0], [0], [1], [0, 0, 1, 1], [], []>} : vector<32x32xf32>, vector<32x8xf32>, vector<32x8xf32> -> vector<32x8xf32>
    %cst_93 = arith.constant 0.000000e+00 : f32
    %145 = vector.broadcast %cst_93 : f32 to vector<32x8xf32>
    %146 = arith.subf %145, %144 : vector<32x8xf32>
    %147 = math.exp %146 : vector<32x8xf32>
    %cst_94 = arith.constant 1.000000e+00 : f32
    %148 = vector.broadcast %cst_94 : f32 to vector<32x8xf32>
    %149 = arith.addf %148, %147 : vector<32x8xf32>
    %150 = tpu.reciprocal %149 {approx = true} : vector<32x8xf32> -> vector<32x8xf32>
    %c0_95 = arith.constant 0 : index
    %c0_96 = arith.constant 0 : index
    %151 = vector.load %arg4[%c0_95, %c0_96] : memref<8x128xf32, #tpu.memory_space<vmem>>, vector<8x128xf32>
    %cst_97 = arith.constant dense<0.000000e+00> : vector<32x128xf32>
    %152 = tpu.matmul %150, %151, %cst_97 {dimension_numbers = #tpu.dot_dimension_numbers<[1], [0], [0], [1], [0, 0, 1, 1], [], []>} : vector<32x8xf32>, vector<8x128xf32>, vector<32x128xf32> -> vector<32x128xf32>
    %153 = arith.mulf %133, %152 : vector<32x128xf32>
    %154 = arith.addf %153, %1 : vector<32x128xf32>
    %c0_98 = arith.constant 0 : index
    %c0_99 = arith.constant 0 : index
    %c0_100 = arith.constant 0 : index
    %155 = vector.load %arg13[%c0_98, %c0_99, %c0_100] : memref<1x32x128xf32, #tpu.memory_space<vmem>>, vector<1x32x128xf32>
    %156 = vector.shape_cast %155 : vector<1x32x128xf32> to vector<32x128xf32>
    %157 = vector.shape_cast %154 : vector<32x128xf32> to vector<1x32x128xf32>
    tpu.vector_store %arg13[%c0_98, %c0_99, %c0_100], %157 {strides = array<i32>} : memref<1x32x128xf32, #tpu.memory_space<vmem>>, vector<1x32x128xf32>,
    return
  }
  func.func @transform_0(%arg0: i32) -> (i32, i32, i32) {
    %c0_i32 = arith.constant 0 : i32
    %c0_i32_0 = arith.constant 0 : i32
    %c0_i32_1 = arith.constant 0 : i32
    return %arg0, %c0_i32, %c0_i32_0 : i32, i32, i32
  }
  func.func @transform_1(%arg0: i32) -> (i32, i32) {
    %c0_i32 = arith.constant 0 : i32
    %c0_i32_0 = arith.constant 0 : i32
    %c0_i32_1 = arith.constant 0 : i32
    return %c0_i32, %c0_i32_0 : i32, i32
  }
  func.func @transform_2(%arg0: i32) -> (i32, i32, i32) {
    %c0_i32 = arith.constant 0 : i32
    %c0_i32_0 = arith.constant 0 : i32
    %c0_i32_1 = arith.constant 0 : i32
    %c0_i32_2 = arith.constant 0 : i32
    return %c0_i32, %c0_i32_0, %c0_i32_1 : i32, i32, i32
  }
  func.func @transform_3(%arg0: i32) -> (i32, i32) {
    %c0_i32 = arith.constant 0 : i32
    %c0_i32_0 = arith.constant 0 : i32
    %c0_i32_1 = arith.constant 0 : i32
    return %c0_i32, %c0_i32_0 : i32, i32
  }
  func.func @transform_4(%arg0: i32) -> (i32, i32, i32) {
    %c0_i32 = arith.constant 0 : i32
    %c0_i32_0 = arith.constant 0 : i32
    %c0_i32_1 = arith.constant 0 : i32
    %c0_i32_2 = arith.constant 0 : i32
    return %c0_i32, %c0_i32_0, %c0_i32_1 : i32, i32, i32
  }
  func.func @transform_5(%arg0: i32) -> (i32, i32) {
    %c0_i32 = arith.constant 0 : i32
    %c0_i32_0 = arith.constant 0 : i32
    %c0_i32_1 = arith.constant 0 : i32
    return %c0_i32, %c0_i32_0 : i32, i32
  }
  func.func @transform_6(%arg0: i32) -> (i32, i32) {
    %c0_i32 = arith.constant 0 : i32
    %c0_i32_0 = arith.constant 0 : i32
    %c0_i32_1 = arith.constant 0 : i32
    return %c0_i32, %c0_i32_0 : i32, i32
  }
  func.func @transform_7(%arg0: i32) -> (i32, i32) {
    %c0_i32 = arith.constant 0 : i32
    %c0_i32_0 = arith.constant 0 : i32
    %c0_i32_1 = arith.constant 0 : i32
    return %c0_i32, %c0_i32_0 : i32, i32
  }
  func.func @transform_8(%arg0: i32) -> (i32, i32) {
    %c0_i32 = arith.constant 0 : i32
    %c0_i32_0 = arith.constant 0 : i32
    %c0_i32_1 = arith.constant 0 : i32
    return %c0_i32, %c0_i32_0 : i32, i32
  }
  func.func @transform_9(%arg0: i32) -> (i32, i32) {
    %c0_i32 = arith.constant 0 : i32
    %c0_i32_0 = arith.constant 0 : i32
    %c0_i32_1 = arith.constant 0 : i32
    return %c0_i32, %c0_i32_0 : i32, i32
  }
  func.func @transform_10(%arg0: i32) -> (i32, i32) {
    %c0_i32 = arith.constant 0 : i32
    %c0_i32_0 = arith.constant 0 : i32
    %c0_i32_1 = arith.constant 0 : i32
    return %c0_i32, %c0_i32_0 : i32, i32
  }
  func.func @transform_11(%arg0: i32) -> (i32, i32, i32) {
    %c0_i32 = arith.constant 0 : i32
    %c0_i32_0 = arith.constant 0 : i32
    %c0_i32_1 = arith.constant 0 : i32
    %c0_i32_2 = arith.constant 0 : i32
    return %c0_i32, %c0_i32_0, %c0_i32_1 : i32, i32, i32
  }
  func.func @transform_12(%arg0: i32) -> (i32, i32, i32) {
    %c0_i32 = arith.constant 0 : i32
    %c0_i32_0 = arith.constant 0 : i32
    %c0_i32_1 = arith.constant 0 : i32
    return %arg0, %c0_i32, %c0_i32_0 : i32, i32, i32
  }
}

</mosaic_0001>

<bundles_post_ra>
// kernel: tpu_custom_call.1
= control target key start
LH: loop header
LB: loop body
LE: loop exit
PB: predicated region body
PF: predicated region fallthrough
CT: control target
= control target key end

     0   :  { %s5155_s0 = inlined_call_operand.vmem [shape: f32[2,32,128], index: 0, kind: input, shape index: {}]   ;;  %s5156_s1 = inlined_call_operand.vmem [shape: f32[128,128], index: 1, kind: input, shape index: {}]   ;;  %s5157_s2 = inlined_call_operand.vmem [shape: f32[2,128,8], index: 2, kind: input, shape index: {}]   ;;  %s5158_s3 = inlined_call_operand.vmem [shape: f32[8,128], index: 3, kind: input, shape index: {}]   ;;  %s5159_s4 = inlined_call_operand.vmem [shape: f32[9,1,128], index: 4, kind: input, shape index: {}]   ;;  %s5160_s5 = inlined_call_operand.vmem [shape: f32[256,1], index: 5, kind: input, shape index: {}]   ;;  %s5161_s6 = inlined_call_operand.vmem [shape: bf16[128,288], index: 6, kind: input, shape index: {}]   ;;  %s5162_s7 = inlined_call_operand.vmem [shape: bf16[64,384], index: 7, kind: input, shape index: {}]   ;;  %s5163_s8 = inlined_call_operand.vmem [shape: bf16[32,64], index: 8, kind: input, shape index: {}]   ;;  %s5164_s9 = inlined_call_operand.vmem [shape: bf16[32,192], index: 9, kind: input, shape index: {}]   ;;  %s5165_s10 = inlined_call_operand.vmem [shape: f32[32,64], index: 10, kind: input, shape index: {}]   ;;  %s5166_s11 = inlined_call_operand.vmem [shape: f32[3,32,32], index: 11, kind: input, shape index: {}]   ;;  %s5167_s12 = inlined_call_operand.hbm [shape: f32[2,32,128], index: 12, kind: output, shape index: {}]  }
   0x1   :  { %5173 = sst [smem:[#allocation7_spill]] %s5155_s0 }
   0x2   :  { %5174 = sst [smem:[#allocation8_spill]] %s5156_s1 }
   0x3   :  { %17 = vsyncpa [#allocation3], 0 }
   0x4   :  { %19 = vsyncpa [#allocation3 + $0x1], 0  ;;  %s4095_s21 = smov 0   ;;  %s4097_s22 = smov 0  }
   0x5   :  { %s4099_s23 = smov 0   ;;  %s4101_s24 = smov 0  }
   0x6 LB: > { %5175 = sst [smem:[#allocation5_spill]] %s4009_s23  ;;  %s4116_s25 = sadd.s32 4294967295, %s4013_s24   ;;  %s4013_s24 = sphi %s4101_s24, %s5187_s24   ;;  %s4009_s23 = sphi %s4099_s23, %s5184_s23   ;;  %s4005_s22 = sphi %s4097_s22, %s5186_s22   ;;  %s4001_s21 = sphi %s4095_s21, %s5185_s21  }
   0x7   : > { %s2918_s26 = sadd.s32 4294967294, %s4013_s24   ;;  %s4120_s27 = sadd.s32 1, %s4013_s24  }
   0x8   : > { %s289_s28 = sadd.s32 1, %s4009_s23  ;;  %s286_s29 = ssub.s32 %s4013_s24, %s4120_s27 }
   0x9   : > { %p299_p0 = scmp.ne.s32.totalorder %s4009_s23, %s4005_s22  ;;  %p287_p1 = scmp.eq.s32.totalorder %s286_s29, 0 }
   0xa   : > { %p300_p2 = scmp.eq.s32.totalorder %s4116_s25, 1  ;;  %p305_p3 = scmp.ne.s32.totalorder %s4005_s22, %s4001_s21 }
   0xb   : > { %p306_p4 = scmp.eq.s32.totalorder %s2918_s26, 1  ;;  %p2921_p7 = scmp.ge.s32.totalorder %s4013_s24, 1 }
   0xc   : > { %s4131_s30 = scalar_select %p287_p1, %s4009_s23, %s289_s28  }
   0xd   : > { %p4133_p5 = por %p300_p2, %p299_p0  ;;  %p4137_p6 = por %p306_p4, %p305_p3 }
   0xe   : > { %5176 = sst [smem:[#allocation6_spill]] %s4131_s30  ;;  %p365_p8 = scmp.lt.s32.totalorder %s4013_s24, 3 }
  0x10   : > { %p366_p9 = pnand %p2921_p7, %p365_p8 }
  0x11   : > { %s5179_s1 = sld [smem:[#allocation8_spill]] (!%p366_p9)  ;;  %p407_p10 = scmp.lt.s32.totalorder (!%p366_p9), %s4116_s25, 1  ;;  %v3855_v38 = vld [vmem:[%s5161_s6 + $0x4] ss:$12 sps:$4 sm:$0xff] (!%p366_p9)   ;;  %v3859_v39 = vld [vmem:[%s5161_s6 + $0x8] ss:$12 sps:$4 sm:$0xff] (!%p366_p9)  }
  0x12   : > { %369 = sbr.rel (%p366_p9) target bundleno = 3423 (0xd5f), region = 68  ;;  %s5180_s0 = sld [smem:[#allocation7_spill]] (!%p366_p9)  ;;  %1005 = vmatprep.mubr.bf16.mxu1 (!%p366_p9), %v3855_v38  ;;  %vm948_vm0 = vcmask (!%p366_p9), 261120   ;;  %v732_v40 = vld [vmem:[%s5160_s5] sm:$0xff] (!%p366_p9)  ;;  %v733_v41 = vld [vmem:[%s5160_s5 + $0x8] sm:$0xff] (!%p366_p9)  ;;  %v4023_v42 = vmov (!%p366_p9), 0  }
  0x13   : > { %s4015_s20 = smov (!%p366_p9), 5   ;;  %s4016_s28 = smov (!%p366_p9), 125   ;;  %3822 = vset.pattern.permute.xlu1 (!%p366_p9), %v4023_v42  ;;  %3821 = vset.pattern.permute.xlu0 (!%p366_p9), %v4023_v42  ;;  %v735_v43 = vld [vmem:[%s5160_s5 + $0x18] sm:$0xff] (!%p366_p9)  ;;  %v734_v44 = vld [vmem:[%s5160_s5 + $0x10] sm:$0xff] (!%p366_p9)  ;;  %v737_v45 = vld [vmem:[%s5160_s5 + $0x28] sm:$0xff] (!%p366_p9)  ;;  %vm1611_vm1 = vcmask (!%p366_p9), 523264  }
  0x14   : > { %s5171_s29 = smov (!%p366_p9), 1   ;;  %s4018_s15 = smov (!%p366_p9), 123   ;;  %v736_v46 = vld [vmem:[%s5160_s5 + $0x20] sm:$0xff] (!%p366_p9)  ;;  %v739_v47 = vld [vmem:[%s5160_s5 + $0x38] sm:$0xff] (!%p366_p9)  ;;  %v738_v48 = vld [vmem:[%s5160_s5 + $0x30] sm:$0xff] (!%p366_p9)  ;;  %vm2153_vm2 = vcmask (!%p366_p9), 64512  }
  0x15   : > { %s5169_s30 = smov (!%p366_p9), 127   ;;  %s4020_s16 = smov (!%p366_p9), 7   ;;  %v2932_v51 = vld [vmem:[%s5159_s4 + $0x4] ss:$0 sm:$0xff] (!%p366_p9)  ;;  %v741_v52 = vld [vmem:[%s5160_s5 + $0x48] sm:$0xff] (!%p366_p9)  ;;  %v743_v59 = vld [vmem:[%s5160_s5 + $0x58] sm:$0xff] (!%p366_p9) }
  0x16   : > { %v740_v53 = vld [vmem:[%s5160_s5 + $0x40] sm:$0xff] (!%p366_p9)  ;;  %v742_v62 = vld [vmem:[%s5160_s5 + $0x50] sm:$0xff] (!%p366_p9)  ;;  %v745_v63 = vld [vmem:[%s5160_s5 + $0x68] sm:$0xff] (!%p366_p9)  ;;  %s4027_s19 = smov (!%p366_p9), [#allocation2]  }
  0x17   : > { %v417_v0 = vld [vmem:[%s5179_s1] sm:$0xff] (!%p366_p9)  ;;  %v418_v1 = vld [vmem:[%s5179_s1 + $0x8] sm:$0xff] (!%p366_p9)  ;;  %v419_v2 = vld [vmem:[%s5179_s1 + $0x10] sm:$0xff] (!%p366_p9) }
  0x18   : > { %v3596_v3 = vpack.c.bf16 (!%p366_p9), %v418_v1, %v417_v0  ;;  %v420_v4 = vld [vmem:[%s5179_s1 + $0x18] sm:$0xff] (!%p366_p9)  ;;  %v421_v6 = vld [vmem:[%s5179_s1 + $0x20] sm:$0xff] (!%p366_p9)  ;;  %v422_v7 = vld [vmem:[%s5179_s1 + $0x28] sm:$0xff] (!%p366_p9) }
  0x19   : > { %v3600_v5 = vpack.c.bf16 %v420_v4, %v419_v2  ;;  %s408_s17 = scalar_select %p407_p10, %s4116_s25, 1  ;;  %v3604_v8 = vpack.c.bf16 %v422_v7, %v421_v6  ;;  %v423_v9 = vld [vmem:[%s5179_s1 + $0x30] sm:$0xff]  ;;  %v424_v10 = vld [vmem:[%s5179_s1 + $0x38] sm:$0xff]  ;;  %v425_v12 = vld [vmem:[%s5179_s1 + $0x40] sm:$0xff] }
  0x1a   : > { %3597 = vmatprep.subr.bf16.mxu0 %v3596_v3  ;;  %v426_v13 = vld [vmem:[%s5179_s1 + $0x48] sm:$0xff]  ;;  %v3608_v14 = vpack.c.bf16 %v424_v10, %v423_v9  ;;  %v427_v15 = vld [vmem:[%s5179_s1 + $0x50] sm:$0xff]  ;;  %v428_v16 = vld [vmem:[%s5179_s1 + $0x58] sm:$0xff] }
  0x1b   : > { %3599 = vmatpush3.bf16.msra.mxu0 %v3596_v3  ;;  %s3048_s18 = sshll.u32 %s408_s17, 5  ;;  %v3612_v17 = vpack.c.bf16 %v426_v13, %v425_v12  ;;  %v429_v18 = vld [vmem:[%s5179_s1 + $0x60] sm:$0xff]  ;;  %v430_v19 = vld [vmem:[%s5179_s1 + $0x68] sm:$0xff]  ;;  %v3616_v20 = vpack.c.bf16 %v428_v16, %v427_v15  ;;  %v431_v21 = vld [vmem:[%s5179_s1 + $0x70] sm:$0xff]  ;;  %s4021_s17 = smov 3  }
  0x1c   : > { %3601 = vmatprep.subr.bf16.mxu0 %v3600_v5  ;;  %s4166_s26 = scalar_lea.vmem %s5180_s0, %s3048_s18  ;;  %v432_v22 = vld [vmem:[%s5179_s1 + $0x78] sm:$0xff]  ;;  %v3620_v23 = vpack.c.bf16 %v430_v19, %v429_v18  ;;  %v744_v2 = vld [vmem:[%s5160_s5 + $0x60] sm:$0xff]  ;;  %v746_v6 = vld [vmem:[%s5160_s5 + $0x70] sm:$0xff]  ;;  %s4025_s0 = smov 124  }
  0x1d   : > { %v4175_v11 = vld [vmem:[%s4166_s26] sm:$0xff]  ;;  %v3624_v24 = vpack.c.bf16 %v432_v22, %v431_v21  ;;  %v4203_v25 = vld [vmem:[%s4166_s26 + $0x8] sm:$0xff]  ;;  %v4206_v26 = vld [vmem:[%s4166_s26 + $0x10] sm:$0xff] }
  0x1e   : > { %3340 = vmatprep.mubr.f32.mxu0 %v4175_v11  ;;  %v4211_v27 = vld [vmem:[%s4166_s26 + $0x18] sm:$0xff]  ;;  %v2934_v9 = vld [vmem:[%s5159_s4 + $0x5] ss:$0 sm:$0xff] }
  0x1f   : > { %3603 = vmatpush3.bf16.msra.mxu0 %v3600_v5  ;;  %v747_v3 = vld [vmem:[%s5160_s5 + $0x78] sm:$0xff] }
  0x20   : > { %3605 = vmatprep.subr.bf16.mxu0 %v3604_v8 }
  0x23   : > { %3607 = vmatpush3.bf16.msra.mxu0 %v3604_v8 }
  0x24   : > { %3609 = vmatprep.subr.bf16.mxu0 %v3608_v14 }
  0x27   : > { %3611 = vmatpush3.bf16.msra.mxu0 %v3608_v14 }
  0x28   : > { %3613 = vmatprep.subr.bf16.mxu0 %v3612_v17 }
  0x2b   : > { %3615 = vmatpush3.bf16.msra.mxu0 %v3612_v17  ;;  %v4351_v17 = vld [vmem:[%s5159_s4 + $0x1] ss:$0 sm:$0xff] }
  0x2c   : > { %3617 = vmatprep.subr.bf16.mxu0 %v3616_v20 }
  0x2f   : > { %3619 = vmatpush3.bf16.msra.mxu0 %v3616_v20 }
  0x30   : > { %3621 = vmatprep.subr.bf16.mxu0 %v3620_v23 }
  0x33   : > { %3623 = vmatpush3.bf16.msra.mxu0 %v3620_v23 }
  0x34   : > { %3625 = vmatprep.subr.bf16.mxu0 %v3624_v24 }
  0x37   : > { %3627 = vmatpush3.bf16.msra.mxu0 %v3624_v24 }
  0x3a   : > { %3341 = vmatmul.mubr.f32.vlgmr.msra.gmra.mrb[0].mxu0 %v4203_v25 }
  0x3b   : > { %3343 = vmatprep.mubr.f32.mxu0 %v4206_v26 }
  0x3e   : > { %3344 = vmatmul.mubr.f32.gmra.mrb[2].mxu0 %v4211_v27 }
  0x3f   : > { %3350 = vmatprep.mubr.msk.bf16.mxu0 %vm948_vm0, %v3859_v39  ;;  %v2936_v39 = vld [vmem:[%s5159_s4 + $0x6] ss:$0 sm:$0xff] }
 0x10d   : > { %v4214_v28 = vpop.f32.mrb[0].mxu0 }
 0x10e   : > { %v4218_v29 = vsub.f32 %v4203_v25, %v4214_v28  ;;  %v4220_v30 = vpop.f32.mrb[1].mxu0 }
 0x10f   : > { %v4224_v31 = vsub.f32 %v4175_v11, %v4220_v30 }
 0x110   : > { %604 = vrot.lane.b32.xlu1 %v4218_v29, %s4015_s20  ;;  %584 = vrot.lane.b32.xlu0 %v4218_v29, %s4016_s28 }
 0x111   : > { %v4228_v32 = vpop.f32.mrb[2].mxu0  ;;  %v714_v33 = vpack.c.bf16 %v4218_v29, %v4224_v31 }
 0x112   : > { %v4234_v34 = vsub.f32 %v4211_v27, %v4228_v32  ;;  %v4236_v35 = vpop.f32.mrb[3].mxu0 }
 0x113   : > { %v4240_v36 = vsub.f32 %v4206_v26, %v4236_v35 }
 0x114   : > { %524 = vrot.lane.b32.xlu1 %v4218_v29, %s5171_s29  ;;  %582 = vrot.lane.b32.xlu0 %v4224_v31, %s4016_s28 }
 0x115   : > { %v715_v37 = vpack.c.bf16 %v4234_v34, %v4240_v36 }
 0x118   : > { %624 = vrot.lane.b32.xlu1 %v4218_v29, %s4018_s15  ;;  %602 = vrot.lane.b32.xlu0 %v4224_v31, %s4015_s20 }
 0x11c   : > { %522 = vrot.lane.b32.xlu0 %v4224_v31, %s5171_s29  ;;  %588 = vrot.lane.b32.xlu1 %v4234_v34, %s4016_s28 }
 0x120   : > { %622 = vrot.lane.b32.xlu0 %v4224_v31, %s4018_s15  ;;  %608 = vrot.lane.b32.xlu1 %v4234_v34, %s4015_s20 }
 0x124   : > { %542 = vrot.lane.b32.xlu0 %v4224_v31, %s5169_s30  ;;  %528 = vrot.lane.b32.xlu1 %v4234_v34, %s5171_s29 }
 0x128   : > { %642 = vrot.lane.b32.xlu0 %v4224_v31, %s4020_s16  ;;  %586 = vrot.lane.b32.xlu1 %v4240_v36, %s4016_s28  ;;  %s4022_s28 = smov 121  }
 0x12c   : > { %562 = vrot.lane.b32.xlu0 %v4224_v31, %s4021_s17  ;;  %544 = vrot.lane.b32.xlu1 %v4218_v29, %s5169_s30 }
 0x130   : > { %606 = vrot.lane.b32.xlu0 %v4240_v36, %s4015_s20  ;;  %628 = vrot.lane.b32.xlu1 %v4234_v34, %s4018_s15  ;;  %s4026_s20 = smov 120  }
 0x134   : > { %526 = vrot.lane.b32.xlu0 %v4240_v36, %s5171_s29  ;;  %548 = vrot.lane.b32.xlu1 %v4234_v34, %s5169_s30  ;;  %s5181_s29 = smov 1  }
 0x138   : > { %626 = vrot.lane.b32.xlu0 %v4240_v36, %s4018_s15  ;;  %644 = vrot.lane.b32.xlu1 %v4218_v29, %s4020_s16  ;;  %s4024_s15 = smov 126  }
 0x13c   : > { %546 = vrot.lane.b32.xlu0 %v4240_v36, %s5169_s30  ;;  %564 = vrot.lane.b32.xlu1 %v4218_v29, %s4021_s17  ;;  %s5182_s30 = smov 127  }
 0x140   : > { %646 = vrot.lane.b32.xlu0 %v4240_v36, %s4020_s16  ;;  %648 = vrot.lane.b32.xlu1 %v4234_v34, %s4020_s16 }
 0x144   : > { %566 = vrot.lane.b32.xlu0 %v4240_v36, %s4021_s17  ;;  %568 = vrot.lane.b32.xlu1 %v4234_v34, %s4021_s17 }
 0x148   : > { %662 = vrot.lane.b32.xlu0 %v4224_v31, %s4022_s28  ;;  %664 = vrot.lane.b32.xlu1 %v4218_v29, %s4022_s28 }
 0x14c   : > { %666 = vrot.lane.b32.xlu0 %v4240_v36, %s4022_s28  ;;  %668 = vrot.lane.b32.xlu1 %v4234_v34, %s4022_s28 }
 0x150   : > { %750 = vperm.xlu0 %3821, %v732_v40   ;;  %755 = vperm.xlu1 %3822, %v733_v41  }
 0x154   : > { %765 = vperm.xlu0 %3821, %v735_v43   ;;  %760 = vperm.xlu1 %3822, %v734_v44  }
 0x158   : > { %775 = vperm.xlu0 %3821, %v737_v45   ;;  %770 = vperm.xlu1 %3822, %v736_v46  }
 0x15c   : > { %785 = vperm.xlu0 %3821, %v739_v47   ;;  %780 = vperm.xlu1 %3822, %v738_v48  }
 0x160   : > { %795 = vperm.xlu0 %3821, %v741_v52   ;;  %790 = vperm.xlu1 %3822, %v740_v53  }
 0x164   : > { %805 = vperm.xlu0 %3821, %v743_v59   ;;  %800 = vperm.xlu1 %3822, %v742_v62  }
 0x168   : > { %815 = vperm.xlu0 %3821, %v745_v63   ;;  %810 = vperm.xlu1 %3822, %v744_v2   ;;  %v2930_v63 = vld [vmem:[%s5159_s4 + $0x3] ss:$0 sm:$0xff] }
 0x16c   : > { %825 = vperm.xlu0 %3821, %v747_v3   ;;  %820 = vperm.xlu1 %3822, %v746_v6  }
 0x182   : > { %v605_v49 = vpop.permute.xlu1 %604  ;;  %v585_v50 = vpop.permute.xlu0 %584 }
 0x183   : > { %v599_v56 = vmul.f32 %v2932_v51, %v585_v50  ;;  %v619_v16 = vmul.f32 %v2934_v9, %v605_v49 }
 0x186   : > { %v525_v54 = vpop.permute.xlu1 %524  ;;  %v583_v55 = vpop.permute.xlu0 %582 }
 0x187   : > { %v598_v57 = vmul.f32 %v2932_v51, %v583_v55  ;;  %v539_v23 = vmul.f32 %v4351_v17, %v525_v54  ;;  %v2938_v54 = vld [vmem:[%s5159_s4 + $0x7] ss:$0 sm:$0xff] }
 0x189   : > { %v722_v58 = vpack.c.bf16 %v599_v56, %v598_v57 }
 0x18a   : > { %v625_v60 = vpop.permute.xlu1 %624  ;;  %v603_v61 = vpop.permute.xlu0 %602 }
 0x18b   : > { %3070 = vmatprep.subr.bf16.mxu1 %v722_v58  ;;  %v618_v13 = vmul.f32 %v2934_v9, %v603_v61  ;;  %v639_v36 = vmul.f32 %v2936_v39, %v625_v60 }
 0x18c   : > { %3071 = vmatpush3.bf16.msra.mxu1 %v714_v33 }
 0x18d   : > { %v724_v22 = vpack.c.bf16 %v619_v16, %v618_v13 }
 0x18e   : > { %v523_v0 = vpop.permute.xlu0 %522  ;;  %v589_v1 = vpop.permute.xlu1 %588 }
 0x18f   : > { %v601_v14 = vmul.f32 %v2932_v51, %v589_v1  ;;  %v538_v19 = vmul.f32 %v4351_v17, %v523_v0 }
 0x191   : > { %v716_v24 = vpack.c.bf16 %v539_v23, %v538_v19  ;;  %v3856_v23 = vld [vmem:[%s5161_s6 + $0x1c] ss:$12 sps:$4 sm:$0xff]  }
 0x192   : > { %v623_v4 = vpop.permute.xlu0 %622  ;;  %v609_v5 = vpop.permute.xlu1 %608 }
 0x193   : > { %v621_v33 = vmul.f32 %v2934_v9, %v609_v5  ;;  %v638_v41 = vmul.f32 %v2936_v39, %v623_v4 }
 0x195   : > { %v726_v48 = vpack.c.bf16 %v639_v36, %v638_v41  ;;  %v3860_v41 = vld [vmem:[%s5161_s6 + $0x20] ss:$12 sps:$4 sm:$0xff]  }
 0x196   : > { %v543_v7 = vpop.permute.xlu0 %542  ;;  %v529_v8 = vpop.permute.xlu1 %528  ;;  %v3866_v36 = vld [vmem:[%s5161_s6 + $0x4c] ss:$12 sps:$4 sm:$0xff]  }
 0x197   : > { %v541_v45 = vmul.f32 %v4351_v17, %v529_v8 }
 0x19a   : > { %v643_v10 = vpop.permute.xlu0 %642  ;;  %v587_v12 = vpop.permute.xlu1 %586 }
 0x19b   : > { %v600_v15 = vmul.f32 %v2932_v51, %v587_v12  ;;  %v658_v62 = vmul.f32 %v2938_v54, %v643_v10 }
 0x19d   : > { %v723_v18 = vpack.c.bf16 %v601_v14, %v600_v15  ;;  %v2940_v15 = vld [vmem:[%s5159_s4 + $0x8] ss:$0 sm:$0xff] }
 0x19e   : > { %v563_v20 = vpop.permute.xlu0 %562  ;;  %v545_v21 = vpop.permute.xlu1 %544 }
 0x19f   : > { %3072 = vmatprep.subr.bf16.mxu1 %v723_v18  ;;  %v578_v5 = vmul.f32 %v2930_v63, %v563_v20  ;;  %v3853_v20 = vld [vmem:[%s5161_s6] ss:$12 sps:$4 sm:$0xff]  }
 0x1a0   : > { %3073 = vmatpush3.bf16.msra.mxu1 %v715_v37  ;;  %v4366_v37 = vld [vmem:[%s5159_s4 + $0x2] ss:$0 sm:$0xff] }
 0x1a1   : > { %3074 = vmatprep.subr.bf16.mxu1 %v724_v22  ;;  %v559_v46 = vmul.f32 %v4366_v37, %v545_v21  ;;  %v558_v51 = vmul.f32 %v4366_v37, %v543_v7 }
 0x1a2   : > { %v607_v29 = vpop.permute.xlu0 %606  ;;  %v629_v31 = vpop.permute.xlu1 %628 }
 0x1a3   : > { %v620_v38 = vmul.f32 %v2934_v9, %v607_v29  ;;  %v641_v52 = vmul.f32 %v2936_v39, %v629_v31  ;;  %v718_v55 = vpack.c.bf16 %v559_v46, %v558_v51  ;;  %v3872_v46 = vld [vmem:[%s5161_s6 + $0x68] ss:$12 sps:$4 sm:$0xff]   ;;  %v3871_v51 = vld [vmem:[%s5161_s6 + $0x60] ss:$12 sps:$4 sm:$0xff]  }
 0x1a4   : > { %3075 = vmatpush3.bf16.msra.mxu1 %v716_v24 }
 0x1a5   : > { %v725_v40 = vpack.c.bf16 %v621_v33, %v620_v38 }
 0x1a6   : > { %v527_v43 = vpop.permute.xlu0 %526  ;;  %v549_v44 = vpop.permute.xlu1 %548 }
 0x1a7   : > { %v540_v34 = vmul.f32 %v4351_v17, %v527_v43  ;;  %3076 = vmatprep.subr.bf16.mxu1 %v725_v40  ;;  %v561_v60 = vmul.f32 %v4366_v37, %v549_v44  ;;  %v3858_v40 = vld [vmem:[%s5161_s6 + $0x18] ss:$12 sps:$4 sm:$0xff]   ;;  %v3861_v43 = vld [vmem:[%s5161_s6 + $0x34] ss:$12 sps:$4 sm:$0xff]  }
 0x1a8   : > { %v3864_v44 = vld [vmem:[%s5161_s6 + $0x38] ss:$12 sps:$4 sm:$0xff]  }
 0x1a9   : > { %v717_v47 = vpack.c.bf16 %v541_v45, %v540_v34  ;;  %v3863_v45 = vld [vmem:[%s5161_s6 + $0x30] ss:$12 sps:$4 sm:$0xff]  }
 0x1aa   : > { %v627_v49 = vpop.permute.xlu0 %626  ;;  %v645_v50 = vpop.permute.xlu1 %644  ;;  %v3865_v34 = vld [vmem:[%s5161_s6 + $0x50] ss:$12 sps:$4 sm:$0xff]  }
 0x1ab   : > { %v640_v53 = vmul.f32 %v2936_v39, %v627_v49  ;;  %3077 = vmatpush3.bf16.msra.mxu1 %v717_v47  ;;  %v659_v57 = vmul.f32 %v2938_v54, %v645_v50  ;;  %v3868_v47 = vld [vmem:[%s5161_s6 + $0x48] ss:$12 sps:$4 sm:$0xff]   ;;  %v3873_v49 = vld [vmem:[%s5161_s6 + $0x80] ss:$12 sps:$4 sm:$0xff]   ;;  %v3880_v50 = vld [vmem:[%s5161_s6 + $0x98] ss:$12 sps:$4 sm:$0xff]  }
 0x1ac   : > { %3078 = vmatprep.subr.bf16.mxu1 %v726_v48  ;;  %v3869_v48 = vld [vmem:[%s5161_s6 + $0x64] ss:$12 sps:$4 sm:$0xff]  }
 0x1ad   : > { %v727_v56 = vpack.c.bf16 %v641_v52, %v640_v53  ;;  %v728_v2 = vpack.c.bf16 %v659_v57, %v658_v62  ;;  %v3874_v52 = vld [vmem:[%s5161_s6 + $0x7c] ss:$12 sps:$4 sm:$0xff]   ;;  %v3882_v57 = vld [vmem:[%s5161_s6 + $0xac] ss:$12 sps:$4 sm:$0xff]  }
 0x1ae   : > { %v547_v58 = vpop.permute.xlu0 %546  ;;  %v565_v59 = vpop.permute.xlu1 %564  ;;  %v3881_v53 = vld [vmem:[%s5161_s6 + $0xb0] ss:$12 sps:$4 sm:$0xff]  }
 0x1af   : > { %v560_v61 = vmul.f32 %v4366_v37, %v547_v58  ;;  %3079 = vmatpush3.bf16.msra.mxu1 %v718_v55  ;;  %v579_v1 = vmul.f32 %v2930_v63, %v565_v59  ;;  %v3877_v55 = vld [vmem:[%s5161_s6 + $0x94] ss:$12 sps:$4 sm:$0xff]  }
 0x1b0   : > { %3080 = vmatprep.subr.bf16.mxu1 %v727_v56  ;;  %v3879_v56 = vld [vmem:[%s5161_s6 + $0x90] ss:$12 sps:$4 sm:$0xff]   ;;  %v3884_v58 = vld [vmem:[%s5161_s6 + $0xa8] ss:$12 sps:$4 sm:$0xff]  }
 0x1b1   : > { %v719_v0 = vpack.c.bf16 %v561_v60, %v560_v61  ;;  %v720_v8 = vpack.c.bf16 %v579_v1, %v578_v5 }
 0x1b2   : > { %v647_v3 = vpop.permute.xlu0 %646  ;;  %v649_v4 = vpop.permute.xlu1 %648 }
 0x1b3   : > { %v660_v6 = vmul.f32 %v2938_v54, %v647_v3  ;;  %v661_v7 = vmul.f32 %v2938_v54, %v649_v4  ;;  %3081 = vmatpush3.bf16.msra.mxu1 %v719_v0  ;;  %v3876_v54 = vld [vmem:[%s5161_s6 + $0x78] ss:$12 sps:$4 sm:$0xff]  }
 0x1b4   : > { %3082 = vmatprep.subr.bf16.mxu1 %v728_v2 }
 0x1b5   : > { %v729_v9 = vpack.c.bf16 %v661_v7, %v660_v6 }
 0x1b6   : > { %v567_v12 = vpop.permute.xlu0 %566  ;;  %v569_v13 = vpop.permute.xlu1 %568 }
 0x1b7   : > { %v580_v10 = vmul.f32 %v2930_v63, %v567_v12  ;;  %v581_v14 = vmul.f32 %v2930_v63, %v569_v13  ;;  %3083 = vmatpush3.bf16.msra.mxu1 %v720_v8 }
 0x1b8   : > { %3084 = vmatprep.subr.bf16.mxu1 %v729_v9 }
 0x1b9   : > { %v721_v16 = vpack.c.bf16 %v581_v14, %v580_v10 }
 0x1ba   : > { %v663_v18 = vpop.permute.xlu0 %662  ;;  %v665_v19 = vpop.permute.xlu1 %664 }
 0x1bb   : > { %v678_v21 = vmul.f32 %v2940_v15, %v663_v18  ;;  %v679_v22 = vmul.f32 %v2940_v15, %v665_v19  ;;  %3085 = vmatpush3.bf16.msra.mxu1 %v721_v16 }
 0x1bd   : > { %v730_v24 = vpack.c.bf16 %v679_v22, %v678_v21 }
 0x1be   : > { %v667_v29 = vpop.permute.xlu0 %666  ;;  %v669_v31 = vpop.permute.xlu1 %668  ;;  %1006 = vmatmul.mubr.bf16.vlgmr.msra.gmra.mrb[0].mxu1 %v3853_v20 }
 0x1bf   : > { %v680_v33 = vmul.f32 %v2940_v15, %v667_v29  ;;  %v681_v38 = vmul.f32 %v2940_v15, %v669_v31  ;;  %3346 = vmatprep.subr.bf16.mxu0 %v730_v24  ;;  %1013 = vmatprep.mubr.bf16.mxu1 %v3856_v23 }
 0x1c0   : > { %3347 = vmatpush3.bf16.msra.mxu0 %v730_v24 }
 0x1c1   : > { %v731_v39 = vpack.c.bf16 %v681_v38, %v680_v33 }
 0x1c3   : > { %3348 = vmatprep.subr.bf16.mxu0 %v731_v39 }
 0x1c4   : > { %3349 = vmatpush3.bf16.msra.mxu0 %v731_v39 }
 0x1c6   : > { %1014 = vmatmul.mubr.bf16.gmra.mrb[4].mxu1 %v3858_v40 }
 0x1c7   : > { %3351 = vmatmul.mubr.msk.bf16.vlgmr.msra.gmra.mrb[4].mxu0 %vm948_vm0, %v3860_v41  ;;  %1021 = vmatprep.mubr.bf16.mxu1 %v3861_v43 }
 0x1c8   : > { %3354 = vmatprep.mubr.msk.bf16.mxu0 %vm948_vm0, %v3864_v44 }
 0x1ce   : > { %1022 = vmatmul.mubr.bf16.gmra.mrb[8].mxu1 %v3863_v45 }
 0x1cf   : > { %3355 = vmatmul.mubr.msk.bf16.gmra.mrb[8].mxu0 %vm948_vm0, %v3865_v34  ;;  %1029 = vmatprep.mubr.bf16.mxu1 %v3866_v36  ;;  %v756_v61 = vpop.permute.xlu1 %755  ;;  %v751_v2 = vpop.permute.xlu0 %750 }
 0x1d0   : > { %3358 = vmatprep.mubr.msk.bf16.mxu0 %vm948_vm0, %v3872_v46 }
 0x1d3   : > { %v761_v3 = vpop.permute.xlu1 %760  ;;  %v766_v20 = vpop.permute.xlu0 %765 }
 0x1d6   : > { %1030 = vmatmul.mubr.bf16.gmra.mrb[12].mxu1 %v3868_v47 }
 0x1d7   : > { %1037 = vmatprep.mubr.bf16.mxu1 %v3869_v48  ;;  %3359 = vmatmul.mubr.msk.bf16.gmra.mrb[12].mxu0 %vm948_vm0, %v3873_v49  ;;  %v771_v31 = vpop.permute.xlu1 %770 }
 0x1d8   : > { %3362 = vmatprep.mubr.msk.bf16.mxu0 %vm948_vm0, %v3880_v50 }
 0x1de   : > { %1038 = vmatmul.mubr.bf16.gmra.mrb[16].mxu1 %v3871_v51 }
 0x1df   : > { %1045 = vmatprep.mubr.bf16.mxu1 %v3874_v52  ;;  %3363 = vmatmul.mubr.msk.bf16.gmra.mrb[16].mxu0 %vm948_vm0, %v3881_v53  ;;  %v776_v52 = vpop.permute.xlu0 %775 }
 0x1e6   : > { %1046 = vmatmul.mubr.bf16.gmra.mrb[20].mxu1 %v3876_v54 }
 0x1e7   : > { %1053 = vmatprep.mubr.bf16.mxu1 %v3877_v55  ;;  %v781_v55 = vpop.permute.xlu1 %780 }
 0x1ee   : > { %1054 = vmatmul.mubr.bf16.gmra.mrb[24].mxu1 %v3879_v56 }
 0x1ef   : > { %1061 = vmatprep.mubr.bf16.mxu1 %v3882_v57 }
 0x1f6   : > { %1062 = vmatmul.mubr.bf16.gmra.mrb[28].mxu1 %v3884_v58 }
 0x291   : > { %v3086_v59 = vpop.f32.mrb[0].mxu1 }
 0x292   : > { %v3087_v60 = vpop.f32.mrb[1].mxu1 }
 0x293   : > { %v3088_v62 = vadd.f32 %v3087_v60, %v3086_v59  ;;  %v3089_v63 = vpop.f32.mrb[2].mxu1 }
 0x294   : > { %v3090_v0 = vpop.f32.mrb[3].mxu1 }
 0x295   : > { %v3091_v1 = vadd.f32 %v3090_v0, %v3089_v63  ;;  %v1008_v7 = vadd.f32 %v3088_v62, %v751_v2 }
 0x297   : > { %v1011_v15 = vadd.f32 %v3091_v1, %v756_v61 }
 0x299   : > { %v3092_v4 = vpop.f32.mrb[4].mxu1 }
 0x29a   : > { %v3352_v5 = vpop.f32.mrb[4].mxu0  ;;  %v3093_v6 = vpop.f32.mrb[5].mxu1 }
 0x29b   : > { %v3094_v8 = vadd.f32 %v3093_v6, %v3092_v4  ;;  %v3095_v9 = vpop.f32.mrb[6].mxu1  ;;  %v1104_v12 = vpop.f32.mrb[5].mxu0 }
 0x29c   : > { %v1105_v13 = vadd.f32 %v1104_v12, %v1008_v7  ;;  %v3096_v10 = vpop.f32.mrb[7].mxu1  ;;  %v3353_v14 = vpop.f32.mrb[6].mxu0 }
 0x29d   : > { %v1016_v16 = vadd.f32 %v3094_v8, %v761_v3  ;;  %v3097_v18 = vadd.f32 %v3096_v10, %v3095_v9  ;;  %v1107_v19 = vpop.f32.mrb[7].mxu0  ;;  %v786_v7 = vpop.permute.xlu0 %785 }
 0x29e   : > { %v4454_v21 = vmax.f32 %v1105_v13, 0.0  ;;  %v1108_v22 = vadd.f32 %v1107_v19, %v1011_v15  ;;  %v791_v12 = vpop.permute.xlu1 %790 }
 0x29f   : > { %v1019_v23 = vadd.f32 %v3097_v18, %v766_v20  ;;  %v1113_v24 = vadd.f32 %v3352_v5, %v1016_v16 }
 0x2a0   : > { %v4456_v29 = vmax.f32 %v1108_v22, 0.0  ;;  %1183 = vrot.lane.b32.xlu1 %v4454_v21, %s5181_s29 }
 0x2a1   : > { %v1116_v33 = vadd.f32 %v3353_v14, %v1019_v23  ;;  %v3098_v38 = vpop.f32.mrb[8].mxu1  ;;  %v4466_v36 = vmax.f32 %v1113_v24, 0.0 }
 0x2a2   : > { %v1295_v39 = vpack.c.bf16 %v4456_v29, %v4454_v21  ;;  %v3099_v40 = vpop.f32.mrb[9].mxu1  ;;  %1185 = vrot.lane.b32.xlu0 %v4456_v29, %s5181_s29  ;;  %v3356_v41 = vpop.f32.mrb[8].mxu0 }
 0x2a3   : > { %v4464_v43 = vmax.f32 %v1116_v33, 0.0  ;;  %v3100_v44 = vadd.f32 %v3099_v40, %v3098_v38  ;;  %v3101_v45 = vpop.f32.mrb[10].mxu1  ;;  %v1120_v34 = vpop.f32.mrb[9].mxu0 }
 0x2a4   : > { %v3102_v46 = vpop.f32.mrb[11].mxu1  ;;  %1231 = vrot.lane.b32.xlu1 %v4454_v21, %s5182_s30  ;;  %v3357_v47 = vpop.f32.mrb[10].mxu0 }
 0x2a5   : > { %v3103_v48 = vadd.f32 %v3102_v46, %v3101_v45  ;;  %v1024_v49 = vadd.f32 %v3100_v44, %v771_v31  ;;  %v1123_v50 = vpop.f32.mrb[11].mxu0  ;;  %v1296_v51 = vpack.c.bf16 %v4464_v43, %v4466_v36 }
 0x2a6   : > { %1233 = vrot.lane.b32.xlu0 %v4456_v29, %s5182_s30 }
 0x2a7   : > { %v1121_v53 = vadd.f32 %v1120_v34, %v1024_v49  ;;  %v1027_v54 = vadd.f32 %v3103_v48, %v776_v52 }
 0x2a8   : > { %1187 = vrot.lane.b32.xlu1 %v4466_v36, %s5181_s29 }
 0x2a9   : > { %v1124_v56 = vadd.f32 %v1123_v50, %v1027_v54  ;;  %v3104_v57 = vpop.f32.mrb[12].mxu1  ;;  %v4478_v60 = vmax.f32 %v1121_v53, 0.0  ;;  %v801_v53 = vpop.permute.xlu1 %800 }
 0x2aa   : > { %v3105_v58 = vpop.f32.mrb[13].mxu1  ;;  %1189 = vrot.lane.b32.xlu0 %v4464_v43, %s5181_s29  ;;  %v3360_v59 = vpop.f32.mrb[12].mxu0 }
 0x2ab   : > { %v4480_v61 = vmax.f32 %v1124_v56, 0.0  ;;  %v3106_v62 = vadd.f32 %v3105_v58, %v3104_v57  ;;  %v3107_v63 = vpop.f32.mrb[14].mxu1  ;;  %v1136_v0 = vpop.f32.mrb[13].mxu0 }
 0x2ac   : > { %v3108_v1 = vpop.f32.mrb[15].mxu1  ;;  %1235 = vrot.lane.b32.xlu1 %v4466_v36, %s5182_s30  ;;  %v3361_v2 = vpop.f32.mrb[14].mxu0 }
 0x2ad   : > { %v1297_v3 = vpack.c.bf16 %v4480_v61, %v4478_v60  ;;  %v1032_v4 = vadd.f32 %v3106_v62, %v781_v55  ;;  %v3109_v5 = vadd.f32 %v3108_v1, %v3107_v63  ;;  %v1139_v6 = vpop.f32.mrb[15].mxu0 }
 0x2ae   : > { %1237 = vrot.lane.b32.xlu0 %v4464_v43, %s5182_s30 }
 0x2af   : > { %v1035_v8 = vadd.f32 %v3109_v5, %v786_v7  ;;  %v1129_v9 = vadd.f32 %v3356_v41, %v1032_v4  ;;  %v796_v41 = vpop.permute.xlu0 %795 }
 0x2b0   : > { %1191 = vrot.lane.b32.xlu1 %v4478_v60, %s5181_s29 }
 0x2b1   : > { %v3110_v13 = vpop.f32.mrb[16].mxu1  ;;  %v1132_v10 = vadd.f32 %v3357_v47, %v1035_v8  ;;  %v4494_v19 = vmax.f32 %v1129_v9, 0.0  ;;  %v811_v9 = vpop.permute.xlu1 %810 }
 0x2b2   : > { %v3111_v14 = vpop.f32.mrb[17].mxu1  ;;  %1193 = vrot.lane.b32.xlu0 %v4480_v61, %s5181_s29  ;;  %v4492_v15 = vpop.f32.mrb[16].mxu0 }
 0x2b3   : > { %v3112_v16 = vadd.f32 %v3111_v14, %v3110_v13  ;;  %v3113_v18 = vpop.f32.mrb[18].mxu1  ;;  %v4496_v20 = vmax.f32 %v1132_v10, 0.0  ;;  %v1152_v22 = vpop.f32.mrb[17].mxu0 }
 0x2b4   : > { %v3114_v23 = vpop.f32.mrb[19].mxu1  ;;  %1239 = vrot.lane.b32.xlu1 %v4478_v60, %s5182_s30  ;;  %v4500_v24 = vpop.f32.mrb[18].mxu0 }
 0x2b5   : > { %v3115_v31 = vadd.f32 %v3114_v23, %v3113_v18  ;;  %v1040_v33 = vadd.f32 %v3112_v16, %v791_v12  ;;  %v1155_v38 = vpop.f32.mrb[19].mxu0  ;;  %v1298_v40 = vpack.c.bf16 %v4496_v20, %v4494_v19  ;;  %v806_v58 = vpop.permute.xlu0 %805 }
 0x2b6   : > { %1241 = vrot.lane.b32.xlu0 %v4480_v61, %s5182_s30 }
 0x2b7   : > { %v1137_v44 = vadd.f32 %v1136_v0, %v1040_v33  ;;  %v1043_v45 = vadd.f32 %v3115_v31, %v796_v41 }
 0x2b8   : > { %1195 = vrot.lane.b32.xlu1 %v4494_v19, %s5181_s29 }
 0x2b9   : > { %v1140_v34 = vadd.f32 %v1139_v6, %v1043_v45  ;;  %v3116_v46 = vpop.f32.mrb[20].mxu1  ;;  %v4510_v48 = vmax.f32 %v1137_v44, 0.0  ;;  %v816_v14 = vpop.permute.xlu0 %815 }
 0x2ba   : > { %v3117_v47 = vpop.f32.mrb[21].mxu1  ;;  %1197 = vrot.lane.b32.xlu0 %v4496_v20, %s5181_s29 }
 0x2bb   : > { %v4512_v49 = vmax.f32 %v1140_v34, 0.0  ;;  %v3118_v50 = vadd.f32 %v3117_v47, %v3116_v46  ;;  %v3119_v52 = vpop.f32.mrb[22].mxu1  ;;  %v821_v34 = vpop.permute.xlu1 %820 }
 0x2bc   : > { %v3120_v54 = vpop.f32.mrb[23].mxu1  ;;  %1243 = vrot.lane.b32.xlu1 %v4494_v19, %s5182_s30 }
 0x2bd   : > { %v1299_v55 = vpack.c.bf16 %v4512_v49, %v4510_v48  ;;  %v1048_v56 = vadd.f32 %v3118_v50, %v801_v53  ;;  %v3121_v57 = vadd.f32 %v3120_v54, %v3119_v52  ;;  %v826_v52 = vpop.permute.xlu0 %825 }
 0x2be   : > { %1245 = vrot.lane.b32.xlu0 %v4496_v20, %s5182_s30 }
 0x2bf   : > { %v1051_v62 = vadd.f32 %v3121_v57, %v806_v58  ;;  %v1145_v63 = vadd.f32 %v3360_v59, %v1048_v56 }
 0x2c0   : > { %1199 = vrot.lane.b32.xlu1 %v4510_v48, %s5181_s29 }
 0x2c1   : > { %v3122_v0 = vpop.f32.mrb[24].mxu1  ;;  %v4522_v1 = vmax.f32 %v1145_v63, 0.0  ;;  %v1148_v4 = vadd.f32 %v3361_v2, %v1051_v62 }
 0x2c2   : > { %v3123_v5 = vpop.f32.mrb[25].mxu1  ;;  %1201 = vrot.lane.b32.xlu0 %v4512_v49, %s5181_s29 }
 0x2c3   : > { %v3124_v6 = vadd.f32 %v3123_v5, %v3122_v0  ;;  %v3125_v7 = vpop.f32.mrb[26].mxu1  ;;  %v4526_v8 = vmax.f32 %v1148_v4, 0.0 }
 0x2c4   : > { %v3126_v12 = vpop.f32.mrb[27].mxu1  ;;  %1203 = vrot.lane.b32.xlu1 %v4522_v1, %s5181_s29 }
 0x2c5   : > { %v3127_v59 = vadd.f32 %v3126_v12, %v3125_v7  ;;  %v1056_v13 = vadd.f32 %v3124_v6, %v811_v9  ;;  %v1300_v10 = vpack.c.bf16 %v4526_v8, %v4522_v1 }
 0x2c6   : > { %1205 = vrot.lane.b32.xlu0 %v4526_v8, %s5181_s29 }
 0x2c7   : > { %v1153_v2 = vadd.f32 %v1152_v22, %v1056_v13  ;;  %v1059_v16 = vadd.f32 %v3127_v59, %v816_v14 }
 0x2c9   : > { %v4534_v18 = vmax.f32 %v1153_v2, 0.0  ;;  %v1156_v23 = vadd.f32 %v1155_v38, %v1059_v16  ;;  %v3128_v31 = vpop.f32.mrb[28].mxu1  ;;  %v3887_v38 = vld [vmem:[%s5162_s7 + $0x4] ss:$12 sps:$4 sm:$0xff]  }
 0x2ca   : > { %v3129_v33 = vpop.f32.mrb[29].mxu1  ;;  %1463 = vmatprep.mubr.bf16.mxu0 %v3887_v38 }
 0x2cb   : > { %v4536_v41 = vmax.f32 %v1156_v23, 0.0  ;;  %v3130_v44 = vadd.f32 %v3129_v33, %v3128_v31  ;;  %v3131_v45 = vpop.f32.mrb[30].mxu1  ;;  %1207 = vrot.lane.b32.xlu1 %v4534_v18, %s5181_s29 }
 0x2cc   : > { %v3132_v46 = vpop.f32.mrb[31].mxu1 }
 0x2cd   : > { %v1301_v47 = vpack.c.bf16 %v4536_v41, %v4534_v18  ;;  %v1064_v50 = vadd.f32 %v3130_v44, %v821_v34  ;;  %v3133_v22 = vadd.f32 %v3132_v46, %v3131_v45  ;;  %1209 = vrot.lane.b32.xlu0 %v4536_v41, %s5181_s29 }
 0x2cf   : > { %v1067_v53 = vadd.f32 %v3133_v22, %v826_v52  ;;  %v1161_v54 = vadd.f32 %v4492_v15, %v1064_v50  ;;  %v3891_v15 = vld [vmem:[%s5162_s7 + $0x8] ss:$12 sps:$4 sm:$0xff]  }
 0x2d0   : > { %3382 = vmatprep.mubr.bf16.mxu1 %v3891_v15 }
 0x2d1   : > { %v4548_v56 = vmax.f32 %v1161_v54, 0.0  ;;  %v1164_v57 = vadd.f32 %v4500_v24, %v1067_v53 }
 0x2d3   : > { %1211 = vrot.lane.b32.xlu1 %v4548_v56, %s5181_s29  ;;  %v4553_v58 = vmax.f32 %v1164_v57, 0.0 }
 0x2d5   : > { %1213 = vrot.lane.b32.xlu0 %v4553_v58, %s5181_s29  ;;  %v1302_v62 = vpack.c.bf16 %v4553_v58, %v4548_v56 }
 0x2d7   : > { %1247 = vrot.lane.b32.xlu1 %v4510_v48, %s5182_s30 }
 0x2d9   : > { %1249 = vrot.lane.b32.xlu0 %v4512_v49, %s5182_s30 }
 0x2db   : > { %1251 = vrot.lane.b32.xlu1 %v4522_v1, %s5182_s30 }
 0x2dd   : > { %1253 = vrot.lane.b32.xlu0 %v4526_v8, %s5182_s30 }
 0x2df   : > { %1255 = vrot.lane.b32.xlu1 %v4534_v18, %s5182_s30 }
 0x2e1   : > { %1257 = vrot.lane.b32.xlu0 %v4536_v41, %s5182_s30 }
 0x2e3   : > { %1259 = vrot.lane.b32.xlu1 %v4548_v56, %s5182_s30 }
 0x2e5   : > { %1261 = vrot.lane.b32.xlu0 %v4553_v58, %s5182_s30 }
 0x2e7   : > { %1772 = vrot.lane.b32.xlu1 %v4175_v11, %s5182_s30 }
 0x2e9   : > { %1774 = vrot.lane.b32.xlu0 %v4203_v25, %s5182_s30 }
 0x2eb   : > { %1776 = vrot.lane.b32.xlu1 %v4206_v26, %s5182_s30 }
 0x2ed   : > { %1778 = vrot.lane.b32.xlu0 %v4211_v27, %s5182_s30 }
 0x312   : > { %v1184_v24 = vpop.permute.xlu1 %1183 }
 0x313   : > { %v1215_v0 = vmul.f32 %v4351_v17, %v1184_v24 }
 0x314   : > { %v1186_v63 = vpop.permute.xlu0 %1185 }
 0x315   : > { %v1216_v4 = vmul.f32 %v4351_v17, %v1186_v63 }
 0x316   : > { %v1232_v5 = vpop.permute.xlu1 %1231 }
 0x317   : > { %v1303_v6 = vpack.c.bf16 %v1216_v4, %v1215_v0  ;;  %v1263_v11 = vmul.f32 %v4366_v37, %v1232_v5 }
 0x318   : > { %v1234_v7 = vpop.permute.xlu0 %1233 }
 0x319   : > { %v1264_v9 = vmul.f32 %v4366_v37, %v1234_v7  ;;  %3144 = vmatprep.subr.bf16.mxu0 %v1303_v6 }
 0x31a   : > { %v1188_v25 = vpop.permute.xlu1 %1187  ;;  %3145 = vmatpush3.bf16.msra.mxu0 %v1295_v39 }
 0x31b   : > { %v1311_v26 = vpack.c.bf16 %v1264_v9, %v1263_v11  ;;  %v1217_v12 = vmul.f32 %v4351_v17, %v1188_v25 }
 0x31c   : > { %v1190_v27 = vpop.permute.xlu0 %1189 }
 0x31d   : > { %v1218_v59 = vmul.f32 %v4351_v17, %v1190_v27  ;;  %3366 = vmatprep.subr.bf16.mxu1 %v1311_v26 }
 0x31e   : > { %3367 = vmatpush3.bf16.msra.mxu1 %v1311_v26  ;;  %v1236_v13 = vpop.permute.xlu1 %1235 }
 0x31f   : > { %v1304_v14 = vpack.c.bf16 %v1218_v59, %v1217_v12  ;;  %v1265_v16 = vmul.f32 %v4366_v37, %v1236_v13  ;;  %v3885_v59 = vld [vmem:[%s5162_s7] ss:$12 sps:$4 sm:$0xff]  }
 0x320   : > { %v1238_v2 = vpop.permute.xlu0 %1237 }
 0x321   : > { %v1266_v23 = vmul.f32 %v4366_v37, %v1238_v2  ;;  %3146 = vmatprep.subr.bf16.mxu0 %v1304_v14 }
 0x322   : > { %v1192_v31 = vpop.permute.xlu1 %1191  ;;  %3147 = vmatpush3.bf16.msra.mxu0 %v1296_v51 }
 0x323   : > { %v1312_v21 = vpack.c.bf16 %v1266_v23, %v1265_v16  ;;  %v1219_v39 = vmul.f32 %v4351_v17, %v1192_v31 }
 0x324   : > { %v1194_v29 = vpop.permute.xlu0 %1193 }
 0x325   : > { %v1220_v33 = vmul.f32 %v4351_v17, %v1194_v29  ;;  %3368 = vmatprep.subr.bf16.mxu1 %v1312_v21 }
 0x326   : > { %3369 = vmatpush3.bf16.msra.mxu1 %v1312_v21  ;;  %v1240_v44 = vpop.permute.xlu1 %1239  ;;  %v3893_v21 = vld [vmem:[%s5162_s7 + $0x34] ss:$12 sps:$4 sm:$0xff]  }
 0x327   : > { %v1305_v45 = vpack.c.bf16 %v1220_v33, %v1219_v39  ;;  %v1267_v46 = vmul.f32 %v4366_v37, %v1240_v44 }
 0x328   : > { %v1242_v34 = vpop.permute.xlu0 %1241 }
 0x329   : > { %v1268_v50 = vmul.f32 %v4366_v37, %v1242_v34  ;;  %3148 = vmatprep.subr.bf16.mxu0 %v1305_v45 }
 0x32a   : > { %v1196_v22 = vpop.permute.xlu1 %1195  ;;  %3149 = vmatpush3.bf16.msra.mxu0 %v1297_v3 }
 0x32b   : > { %v1313_v43 = vpack.c.bf16 %v1268_v50, %v1267_v46  ;;  %v1221_v51 = vmul.f32 %v4351_v17, %v1196_v22  ;;  %v3941_v46 = vld [vmem:[%s4166_s26] sm:$0xff] }
 0x32c   : > { %v1198_v36 = vpop.permute.xlu0 %1197 }
 0x32d   : > { %v1222_v38 = vmul.f32 %v4351_v17, %v1198_v36  ;;  %3370 = vmatprep.subr.bf16.mxu1 %v1313_v43 }
 0x32e   : > { %3371 = vmatpush3.bf16.msra.mxu1 %v1313_v43  ;;  %v1244_v52 = vpop.permute.xlu1 %1243  ;;  %v4656_v43 = vld [vmem:[%s4166_s26 + $0x8] sm:$0xff] }
 0x32f   : > { %v1306_v53 = vpack.c.bf16 %v1222_v38, %v1221_v51  ;;  %v1269_v57 = vmul.f32 %v4366_v37, %v1244_v52  ;;  %v3895_v38 = vld [vmem:[%s5162_s7 + $0x30] ss:$12 sps:$4 sm:$0xff]  }
 0x330   : > { %v1246_v54 = vpop.permute.xlu0 %1245 }
 0x331   : > { %v1270_v15 = vmul.f32 %v4366_v37, %v1246_v54  ;;  %3150 = vmatprep.subr.bf16.mxu0 %v1306_v53  ;;  %v3896_v53 = vld [vmem:[%s5162_s7 + $0x4c] ss:$12 sps:$4 sm:$0xff]  }
 0x332   : > { %v1200_v24 = vpop.permute.xlu1 %1199  ;;  %3151 = vmatpush3.bf16.msra.mxu0 %v1298_v40  ;;  %v3898_v54 = vld [vmem:[%s5162_s7 + $0x38] ss:$12 sps:$4 sm:$0xff]  }
 0x333   : > { %v1314_v60 = vpack.c.bf16 %v1270_v15, %v1269_v57  ;;  %v1223_v3 = vmul.f32 %v4351_v17, %v1200_v24  ;;  %v4672_v15 = vld [vmem:[%s4166_s26 + $0x10] sm:$0xff] }
 0x334   : > { %v1202_v61 = vpop.permute.xlu0 %1201 }
 0x335   : > { %v1224_v63 = vmul.f32 %v4351_v17, %v1202_v61  ;;  %3372 = vmatprep.subr.bf16.mxu1 %v1314_v60 }
 0x336   : > { %3373 = vmatpush3.bf16.msra.mxu1 %v1314_v60  ;;  %v1204_v0 = vpop.permute.xlu1 %1203 }
 0x337   : > { %v1307_v4 = vpack.c.bf16 %v1224_v63, %v1223_v3  ;;  %v1225_v6 = vmul.f32 %v4351_v17, %v1204_v0  ;;  %v4676_v3 = vld [vmem:[%s4166_s26 + $0x18] sm:$0xff] }
 0x338   : > { %v1206_v5 = vpop.permute.xlu0 %1205 }
 0x339   : > { %v1226_v7 = vmul.f32 %v4351_v17, %v1206_v5  ;;  %3152 = vmatprep.subr.bf16.mxu0 %v1307_v4  ;;  %v1319_v5 = vld [vmem:[%s5160_s5 + $0x80] sm:$0xff] }
 0x33a   : > { %3153 = vmatpush3.bf16.msra.mxu0 %v1299_v55 }
 0x33b   : > { %v1308_v19 = vpack.c.bf16 %v1226_v7, %v1225_v6  ;;  %v3899_v7 = vld [vmem:[%s5162_s7 + $0x48] ss:$12 sps:$4 sm:$0xff]  }
 0x33d   : > { %v1208_v20 = vpop.permute.xlu1 %1207  ;;  %3154 = vmatprep.subr.bf16.mxu0 %v1308_v19  ;;  %v3900_v19 = vld [vmem:[%s5162_s7 + $0x50] ss:$12 sps:$4 sm:$0xff]  }
 0x33e   : > { %3155 = vmatpush3.bf16.msra.mxu0 %v1300_v10  ;;  %v1227_v11 = vmul.f32 %v4351_v17, %v1208_v20  ;;  %v1320_v20 = vld [vmem:[%s5160_s5 + $0x88] sm:$0xff] }
 0x33f   : > { %v1210_v40 = vpop.permute.xlu0 %1209 }
 0x340   : > { %v1228_v9 = vmul.f32 %v4351_v17, %v1210_v40  ;;  %v1321_v40 = vld [vmem:[%s5160_s5 + $0x90] sm:$0xff] }
 0x342   : > { %v1309_v25 = vpack.c.bf16 %v1228_v9, %v1227_v11 }
 0x344   : > { %3156 = vmatprep.subr.bf16.mxu0 %v1309_v25 }
 0x345   : > { %v1212_v26 = vpop.permute.xlu1 %1211  ;;  %3157 = vmatpush3.bf16.msra.mxu0 %v1301_v47 }
 0x346   : > { %v1229_v49 = vmul.f32 %v4351_v17, %v1212_v26 }
 0x347   : > { %v1214_v48 = vpop.permute.xlu0 %1213 }
 0x348   : > { %v1230_v55 = vmul.f32 %v4351_v17, %v1214_v48  ;;  %v3888_v17 = vld [vmem:[%s5162_s7 + $0x1c] ss:$12 sps:$4 sm:$0xff]  }
 0x349   : > { %v1248_v27 = vpop.permute.xlu1 %1247 }
 0x34a   : > { %v1310_v1 = vpack.c.bf16 %v1230_v55, %v1229_v49  ;;  %v1271_v10 = vmul.f32 %v4366_v37, %v1248_v27 }
 0x34b   : > { %v1250_v8 = vpop.permute.xlu0 %1249 }
 0x34c   : > { %v1272_v12 = vmul.f32 %v4366_v37, %v1250_v8  ;;  %3158 = vmatprep.subr.bf16.mxu0 %v1310_v1 }
 0x34d   : > { %v1252_v13 = vpop.permute.xlu1 %1251  ;;  %3159 = vmatpush3.bf16.msra.mxu0 %v1302_v62  ;;  %v3890_v62 = vld [vmem:[%s5162_s7 + $0x18] ss:$12 sps:$4 sm:$0xff]  }
 0x34e   : > { %v1315_v18 = vpack.c.bf16 %v1272_v12, %v1271_v10  ;;  %v1273_v47 = vmul.f32 %v4366_v37, %v1252_v13  ;;  %v1322_v12 = vld [vmem:[%s5160_s5 + $0x98] sm:$0xff]  ;;  %v1324_v13 = vld [vmem:[%s5160_s5 + $0xa8] sm:$0xff] }
 0x34f   : > { %v1254_v41 = vpop.permute.xlu0 %1253 }
 0x350   : > { %v1274_v14 = vmul.f32 %v4366_v37, %v1254_v41  ;;  %1464 = vmatmul.mubr.bf16.vlgmr.msra.gmra.mrb[20].mxu0 %v3885_v59  ;;  %3374 = vmatprep.subr.bf16.mxu1 %v1315_v18  ;;  %v1325_v41 = vld [vmem:[%s5160_s5 + $0xb0] sm:$0xff] }
 0x351   : > { %3375 = vmatpush3.bf16.msra.mxu1 %v1315_v18  ;;  %v1256_v2 = vpop.permute.xlu1 %1255  ;;  %1471 = vmatprep.mubr.bf16.mxu0 %v3888_v17  ;;  %v1323_v17 = vld [vmem:[%s5160_s5 + $0xa0] sm:$0xff]  ;;  %v1326_v18 = vld [vmem:[%s5160_s5 + $0xb8] sm:$0xff] }
 0x352   : > { %v1316_v16 = vpack.c.bf16 %v1274_v14, %v1273_v47  ;;  %v1275_v56 = vmul.f32 %v4366_v37, %v1256_v2  ;;  %v3901_v47 = vld [vmem:[%s5163_s8] sm:$0xff]   ;;  %v1672_v2 = vld [vmem:[%s5157_s2 + $0x8] sm:$0xff] }
 0x353   : > { %v1258_v23 = vpop.permute.xlu0 %1257  ;;  %v1671_v14 = vld [vmem:[%s5157_s2] sm:$0xff] }
 0x354   : > { %v1276_v58 = vmul.f32 %v4366_v37, %v1258_v23  ;;  %3376 = vmatprep.subr.bf16.mxu1 %v1316_v16  ;;  %v4734_v23 = vpack.c.bf16 %v1672_v2, %v1671_v14 }
 0x355   : > { %3377 = vmatpush3.bf16.msra.mxu1 %v1316_v16  ;;  %v1260_v31 = vpop.permute.xlu1 %1259  ;;  %v1673_v16 = vld [vmem:[%s5157_s2 + $0x10] sm:$0xff] }
 0x356   : > { %v1317_v29 = vpack.c.bf16 %v1276_v58, %v1275_v56  ;;  %v1277_v33 = vmul.f32 %v4366_v37, %v1260_v31  ;;  %v1674_v56 = vld [vmem:[%s5157_s2 + $0x18] sm:$0xff]  ;;  %v1676_v31 = vld [vmem:[%s5157_s2 + $0x28] sm:$0xff] }
 0x357   : > { %v1262_v39 = vpop.permute.xlu0 %1261  ;;  %v4739_v58 = vpack.c.bf16 %v1674_v56, %v1673_v16 }
 0x358   : > { %v1278_v44 = vmul.f32 %v4366_v37, %v1262_v39  ;;  %1472 = vmatmul.mubr.bf16.gmra.mrb[24].mxu0 %v3890_v62  ;;  %3378 = vmatprep.subr.bf16.mxu1 %v1317_v29  ;;  %v3892_v37 = vld [vmem:[%s5162_s7 + $0x20] ss:$12 sps:$4 sm:$0xff]   ;;  %v1678_v39 = vld [vmem:[%s5157_s2 + $0x38] sm:$0xff] }
 0x359   : > { %3379 = vmatpush3.bf16.msra.mxu1 %v1317_v29  ;;  %v1773_v45 = vpop.permute.xlu1 %1772  ;;  %1479 = vmatprep.mubr.bf16.mxu0 %v3893_v21  ;;  %v1675_v62 = vld [vmem:[%s5157_s2 + $0x20] sm:$0xff]  ;;  %v1677_v29 = vld [vmem:[%s5157_s2 + $0x30] sm:$0xff] }
 0x35a   : > { %v1318_v34 = vpack.c.bf16 %v1278_v44, %v1277_v33  ;;  %v1780_v50 = vadd.f32 %v3941_v46, %v1773_v45  ;;  %v4750_v21 = vpack.c.bf16 %v1676_v31, %v1675_v62  ;;  %v4760_v33 = vpack.c.bf16 %v1678_v39, %v1677_v29  ;;  %v1679_v44 = vld [vmem:[%s5157_s2 + $0x40] sm:$0xff]  ;;  %v1680_v45 = vld [vmem:[%s5157_s2 + $0x48] sm:$0xff] }
 0x35b   : > { %v1775_v22 = vpop.permute.xlu0 %1774 }
 0x35c   : > { %v1781_v36 = vadd.f32 %v4656_v43, %v1775_v22  ;;  %v1784_v51 = vmul.f32 0.5, %v1780_v50  ;;  %3380 = vmatprep.subr.bf16.mxu1 %v1318_v34  ;;  %v1682_v50 = vld [vmem:[%s5157_s2 + $0x58] sm:$0xff] }
 0x35d   : > { %3381 = vmatpush3.bf16.msra.mxu1 %v1318_v34  ;;  %v1777_v52 = vpop.permute.xlu1 %1776  ;;  %v4770_v34 = vpack.c.bf16 %v1680_v45, %v1679_v44 }
 0x35e   : > { %v1785_v57 = vmul.f32 0.5, %v1781_v36  ;;  %v1782_v24 = vadd.f32 %v4672_v15, %v1777_v52  ;;  %3629 = vmatprep.subr.bf16.mxu1 %v4734_v23  ;;  %v1683_v36 = vld [vmem:[%s5157_s2 + $0x60] sm:$0xff]  ;;  %v1686_v52 = vld [vmem:[%s5157_s2 + $0x78] sm:$0xff] }
 0x35f   : > { %v1779_v60 = vpop.permute.xlu0 %1778 }
 0x360   : > { %v3823_v61 = vpack.i.bf16 %v1785_v57, %v1784_v51  ;;  %v1783_v63 = vadd.f32 %v4676_v3, %v1779_v60  ;;  %v1786_v0 = vmul.f32 0.5, %v1782_v24  ;;  %3383 = vmatmul.mubr.bf16.vlgmr.msra.gmra.mrb[32].mxu1 %v3892_v37  ;;  %1480 = vmatmul.mubr.bf16.gmra.mrb[28].mxu0 %v3895_v38  ;;  %v1685_v38 = vld [vmem:[%s5157_s2 + $0x70] sm:$0xff] }
 0x361   : > { %1487 = vmatprep.mubr.bf16.mxu0 %v3896_v53  ;;  %3386 = vmatprep.mubr.bf16.mxu1 %v3898_v54  ;;  %v4800_v53 = vpack.c.bf16 %v1686_v52, %v1685_v38 }
 0x362   : > { %v1787_v4 = vmul.f32 0.5, %v1783_v63  ;;  %3824 = vrot.lane.b32.xlu1 %v3823_v61, %s4024_s15  ;;  %3631 = vmatpush3.bf16.msra.mxu1 %v4734_v23 }
 0x363   : > { %3633 = vmatprep.subr.bf16.mxu1 %v4739_v58 }
 0x364   : > { %v3828_v6 = vpack.i.bf16 %v1787_v4, %v1786_v0 }
 0x366   : > { %1329 = vperm.xlu1 %3822, %v1319_v5   ;;  %3829 = vrot.lane.b32.xlu0 %v3828_v6, %s4024_s15  ;;  %s3049_s15 = sshll.u32 %s4116_s25, 9 }
 0x367   : > { %3635 = vmatpush3.bf16.msra.mxu1 %v4739_v58  ;;  %s5111_s25 = scalar_lea.hbm %s5167_s12, %s3049_s15 }
 0x368   : > { %1488 = vmatmul.mubr.bf16.gmra.mrb[32].mxu0 %v3899_v7  ;;  %3387 = vmatmul.mubr.bf16.gmra.mrb[36].mxu1 %v3900_v19 }
 0x369   : > { %3434 = vmatprep.mubr.f32.mxu1 %v3941_v46  ;;  %3398 = vmatprep.mubr.msk.bf16.mxu0 %vm1611_vm1, %v3901_v47  ;;  %v1681_v46 = vld [vmem:[%s5157_s2 + $0x50] sm:$0xff] }
 0x36a   : > { %1334 = vperm.xlu0 %3821, %v1320_v20   ;;  %3637 = vmatprep.subr.bf16.mxu1 %v4750_v21  ;;  %v4780_v22 = vpack.c.bf16 %v1682_v50, %v1681_v46 }
 0x36b   : > { %3639 = vmatpush3.bf16.msra.mxu1 %v4750_v21 }
 0x36c   : > { %3641 = vmatprep.subr.bf16.mxu1 %v4760_v33 }
 0x36e   : > { %1339 = vperm.xlu0 %3821, %v1321_v40  }
 0x36f   : > { %3643 = vmatpush3.bf16.msra.mxu1 %v4760_v33 }
 0x370   : > { %3645 = vmatprep.subr.bf16.mxu1 %v4770_v34 }
 0x373   : > { %3647 = vmatpush3.bf16.msra.mxu1 %v4770_v34 }
 0x374   : > { %3649 = vmatprep.subr.bf16.mxu1 %v4780_v22 }
 0x377   : > { %3651 = vmatpush3.bf16.msra.mxu1 %v4780_v22 }
 0x3d4   : > { %v3825_v11 = vpop.permute.xlu1 %3824 }
 0x3d5   : > { %v3827_v9 = vunpack.i.h.bf16 %v3825_v11  ;;  %v3826_v25 = vunpack.i.l.bf16 %v3825_v11 }
 0x3d7   : > { %v4694_v26 = vmax.f32 %v1785_v57, %v3827_v9  ;;  %v4696_v48 = vmax.f32 %v1784_v51, %v3826_v25  ;;  %v1684_v51 = vld [vmem:[%s5157_s2 + $0x68] sm:$0xff] }
 0x3d8   : > { %v3830_v49 = vpop.permute.xlu0 %3829  ;;  %v4790_v37 = vpack.c.bf16 %v1684_v51, %v1683_v36 }
 0x3d9   : > { %v3832_v55 = vunpack.i.h.bf16 %v3830_v49  ;;  %v3831_v27 = vunpack.i.l.bf16 %v3830_v49  ;;  %v3833_v1 = vpack.i.bf16 %v4694_v26, %v4696_v48 }
 0x3da   : > { %3653 = vmatprep.subr.bf16.mxu1 %v4790_v37 }
 0x3db   : > { %v4700_v8 = vmax.f32 %v1787_v4, %v3832_v55  ;;  %v4702_v10 = vmax.f32 %v1786_v0, %v3831_v27  ;;  %3834 = vrot.lane.b32.xlu1 %v3833_v1, %s4025_s0  ;;  %3655 = vmatpush3.bf16.msra.mxu1 %v4790_v37 }
 0x3dc   : > { %3657 = vmatprep.subr.bf16.mxu1 %v4800_v53 }
 0x3dd   : > { %v3838_v59 = vpack.i.bf16 %v4700_v8, %v4702_v10 }
 0x3df   : > { %3839 = vrot.lane.b32.xlu0 %v3838_v59, %s4025_s0  ;;  %1344 = vperm.xlu1 %3822, %v1322_v12  }
 0x3e0   : > { %3659 = vmatpush3.bf16.msra.mxu1 %v4800_v53 }
 0x3e3   : > { %1354 = vperm.xlu0 %3821, %v1324_v13   ;;  %1349 = vperm.xlu1 %3822, %v1323_v17  }
 0x3e4   : > { %3435 = vmatmul.mubr.f32.vlgmr.msra.gmra.mrb[40].mxu1 %v4656_v43 }
 0x3e5   : > { %3437 = vmatprep.mubr.f32.mxu1 %v4672_v15  ;;  %v1330_v11 = vpop.permute.xlu1 %1329 }
 0x3e7   : > { %1364 = vperm.xlu0 %3821, %v1326_v18   ;;  %1359 = vperm.xlu1 %3822, %v1325_v41  }
 0x3e8   : > { %3438 = vmatmul.mubr.f32.gmra.mrb[42].mxu1 %v4676_v3 }
 0x3e9   : > { %v1335_v0 = vpop.permute.xlu0 %1334 }
 0x3ed   : > { %v1340_v40 = vpop.permute.xlu0 %1339 }
 0x423   : > { %v3160_v54 = vpop.f32.mrb[20].mxu0 }
 0x424   : > { %v3161_v57 = vpop.f32.mrb[21].mxu0 }
 0x425   : > { %v3162_v24 = vadd.f32 %v3161_v57, %v3160_v54  ;;  %v3163_v60 = vpop.f32.mrb[22].mxu0 }
 0x426   : > { %v3164_v61 = vpop.f32.mrb[23].mxu0 }
 0x427   : > { %v3165_v63 = vadd.f32 %v3164_v61, %v3163_v60  ;;  %v1466_v15 = vadd.f32 %v3162_v24, %v1330_v11 }
 0x429   : > { %v1469_v12 = vadd.f32 %v3165_v63, %v1335_v0 }
 0x42b   : > { %v3166_v4 = vpop.f32.mrb[24].mxu0 }
 0x42c   : > { %v3167_v5 = vpop.f32.mrb[25].mxu0 }
 0x42d   : > { %v3168_v6 = vadd.f32 %v3167_v5, %v3166_v4  ;;  %v3169_v7 = vpop.f32.mrb[26].mxu0  ;;  %v1578_v5 = vld [vmem:[%s5160_s5 + $0xc8] sm:$0xff] }
 0x42e   : > { %v3170_v19 = vpop.f32.mrb[27].mxu0 }
 0x42f   : > { %v3171_v20 = vadd.f32 %v3170_v19, %v3169_v7  ;;  %v1474_v43 = vadd.f32 %v3168_v6, %v1340_v40 }
 0x433   : > { %v3384_v9 = vpop.f32.mrb[32].mxu1  ;;  %v3172_v25 = vpop.f32.mrb[28].mxu0 }
 0x434   : > { %v1539_v3 = vadd.f32 %v3384_v9, %v1474_v43  ;;  %v1530_v49 = vpop.f32.mrb[33].mxu1  ;;  %v3173_v55 = vpop.f32.mrb[29].mxu0 }
 0x435   : > { %v1531_v27 = vadd.f32 %v1530_v49, %v1466_v15  ;;  %v3385_v1 = vpop.f32.mrb[34].mxu1  ;;  %v3174_v59 = vadd.f32 %v3173_v55, %v3172_v25  ;;  %v3175_v13 = vpop.f32.mrb[30].mxu0 }
 0x436   : > { %v1533_v17 = vpop.f32.mrb[35].mxu1  ;;  %v3176_v18 = vpop.f32.mrb[31].mxu0  ;;  %v1563_v43 = vmax.f32 %v1539_v3, 0.0  ;;  %v2989_v3 = vld [vmem:[%s5157_s2 + $0x80] sm:$0xff] }
 0x437   : > { %v1534_v41 = vadd.f32 %v1533_v17, %v1469_v12  ;;  %v3177_v47 = vadd.f32 %v3176_v18, %v3175_v13  ;;  %v1561_v14 = vmax.f32 %v1531_v27, 0.0 }
 0x439   : > { %v1562_v2 = vmax.f32 %v1534_v41, 0.0 }
 0x43b   : > { %v1573_v16 = vpack.c.bf16 %v1562_v2, %v1561_v14  ;;  %v3178_v56 = vpop.f32.mrb[32].mxu0  ;;  %v3388_v62 = vpop.f32.mrb[36].mxu1 }
 0x43c   : > { %v1546_v31 = vpop.f32.mrb[37].mxu1  ;;  %v3179_v29 = vpop.f32.mrb[33].mxu0 }
 0x43d   : > { %3390 = vmatprep.subr.bf16.mxu0 %v1573_v16  ;;  %v3180_v39 = vadd.f32 %v3179_v29, %v3178_v56  ;;  %v3181_v44 = vpop.f32.mrb[34].mxu0  ;;  %v3389_v45 = vpop.f32.mrb[38].mxu1  ;;  %v2991_v29 = vld [vmem:[%s5157_s2 + $0x90] sm:$0xff] }
 0x43e   : > { %3391 = vmatpush3.bf16.msra.mxu0 %v1573_v16  ;;  %v3182_v46 = vpop.f32.mrb[35].mxu0  ;;  %v1549_v50 = vpop.f32.mrb[39].mxu1 }
 0x43f   : > { %v3183_v36 = vadd.f32 %v3182_v46, %v3181_v44  ;;  %v2994_v46 = vld [vmem:[%s5157_s2 + $0xa8] sm:$0xff] }
 0x44d   : > { %v3835_v51 = vpop.permute.xlu1 %3834 }
 0x44e   : > { %v3837_v38 = vunpack.i.h.bf16 %v3835_v51  ;;  %v3836_v52 = vunpack.i.l.bf16 %v3835_v51  ;;  %v2996_v51 = vld [vmem:[%s5157_s2 + $0xb8] sm:$0xff] }
 0x450   : > { %v4809_v54 = vmax.f32 %v4694_v26, %v3837_v38  ;;  %v4812_v57 = vmax.f32 %v4696_v48, %v3836_v52  ;;  %v1577_v26 = vld [vmem:[%s5160_s5 + $0xc0] sm:$0xff] }
 0x451   : > { %v3840_v24 = vpop.permute.xlu0 %3839  ;;  %v2997_v52 = vld [vmem:[%s5157_s2 + $0xc0] sm:$0xff] }
 0x452   : > { %v3842_v60 = vunpack.i.h.bf16 %v3840_v24  ;;  %v3841_v61 = vunpack.i.l.bf16 %v3840_v24  ;;  %v3843_v63 = vpack.i.bf16 %v4809_v54, %v4812_v57  ;;  %v2998_v24 = vld [vmem:[%s5157_s2 + $0xc8] sm:$0xff] }
 0x454   : > { %v4817_v0 = vmax.f32 %v4700_v8, %v3842_v60  ;;  %v4820_v4 = vmax.f32 %v4702_v10, %v3841_v61  ;;  %3844 = vrot.lane.b32.xlu1 %v3843_v63, %s4026_s20  ;;  %v1579_v8 = vld [vmem:[%s5160_s5 + $0xd0] sm:$0xff]  ;;  %v1580_v10 = vld [vmem:[%s5160_s5 + $0xd8] sm:$0xff]  ;;  %v3676_v60 = vpack.c.bf16 %v2998_v24, %v2997_v52  ;;  %v1931_v52 = vld [vmem:[%s5165_s10 + $0x8] sm:$0xff] }
 0x455   : > { %v2999_v61 = vld [vmem:[%s5157_s2 + $0xd0] sm:$0xff]  ;;  %v3000_v63 = vld [vmem:[%s5157_s2 + $0xd8] sm:$0xff] }
 0x456   : > { %v3848_v48 = vpack.i.bf16 %v4817_v0, %v4820_v4  ;;  %v1932_v24 = vld [vmem:[%s5165_s10 + $0x10] sm:$0xff] }
 0x458   : > { %3849 = vrot.lane.b32.xlu0 %v3848_v48, %s4026_s20  ;;  %1583 = vperm.xlu1 %3822, %v1577_v26   ;;  %v3680_v26 = vpack.c.bf16 %v3000_v63, %v2999_v61  ;;  %v3001_v48 = vld [vmem:[%s5157_s2 + $0xe0] sm:$0xff]  ;;  %v1933_v61 = vld [vmem:[%s5165_s10 + $0x18] sm:$0xff]  ;;  %s3955_s20 = sshll.u32 %s4027_s19, 4  ;;  %s3956_s20 = int_to_ptr.vmem [resolvable:$false] %s3955_s20 }
 0x459   : > { %s3957_s28 = scalar_lea.vmem %s3956_s20, 1024 }
 0x45c   : > { %1588 = vperm.xlu0 %3821, %v1578_v5   ;;  %1593 = vperm.xlu1 %3822, %v1579_v8   ;;  %v3002_v5 = vld [vmem:[%s5157_s2 + $0xe8] sm:$0xff] }
 0x45d   : > { %v3684_v8 = vpack.c.bf16 %v3002_v5, %v3001_v48 }
 0x45e   : > { %v1345_v6 = vpop.permute.xlu1 %1344 }
 0x45f   : > { %v1477_v7 = vadd.f32 %v3171_v20, %v1345_v6  ;;  %v3004_v6 = vld [vmem:[%s5157_s2 + $0xf8] sm:$0xff] }
 0x460   : > { %1598 = vperm.xlu0 %3821, %v1580_v10   ;;  %v3003_v10 = vld [vmem:[%s5157_s2 + $0xf0] sm:$0xff] }
 0x461   : > { %v1542_v19 = vadd.f32 %v3385_v1, %v1477_v7  ;;  %v3688_v7 = vpack.c.bf16 %v3004_v6, %v3003_v10 }
 0x462   : > { %v1355_v40 = vpop.permute.xlu0 %1354  ;;  %v1350_v11 = vpop.permute.xlu1 %1349 }
 0x463   : > { %v1564_v9 = vmax.f32 %v1542_v19, 0.0  ;;  %v1485_v15 = vadd.f32 %v3177_v47, %v1355_v40  ;;  %v1482_v25 = vadd.f32 %v3174_v59, %v1350_v11  ;;  %v2990_v59 = vld [vmem:[%s5157_s2 + $0x88] sm:$0xff] }
 0x465   : > { %v1547_v49 = vadd.f32 %v1546_v31, %v1482_v25  ;;  %v1550_v55 = vadd.f32 %v1549_v50, %v1485_v15  ;;  %v1574_v27 = vpack.c.bf16 %v1564_v9, %v1563_v43  ;;  %v3660_v31 = vpack.c.bf16 %v2990_v59, %v2989_v3 }
 0x466   : > { %v1365_v12 = vpop.permute.xlu0 %1364  ;;  %v1360_v13 = vpop.permute.xlu1 %1359 }
 0x467   : > { %v1565_v17 = vmax.f32 %v1547_v49, 0.0  ;;  %v1566_v18 = vmax.f32 %v1550_v55, 0.0  ;;  %v1493_v41 = vadd.f32 %v3183_v36, %v1365_v12  ;;  %v1490_v14 = vadd.f32 %v3180_v39, %v1360_v13  ;;  %3392 = vmatprep.subr.bf16.mxu0 %v1574_v27  ;;  %v3902_v39 = vld [vmem:[%s5163_s8 + $0x8] sm:$0xff]   ;;  %v2995_v36 = vld [vmem:[%s5157_s2 + $0xb0] sm:$0xff] }
 0x468   : > { %3393 = vmatpush3.bf16.msra.mxu0 %v1574_v27  ;;  %v3672_v38 = vpack.c.bf16 %v2996_v51, %v2995_v36 }
 0x469   : > { %v1575_v20 = vpack.c.bf16 %v1566_v18, %v1565_v17  ;;  %v1558_v2 = vadd.f32 %v3389_v45, %v1493_v41  ;;  %v1555_v1 = vadd.f32 %v3388_v62, %v1490_v14  ;;  %v2992_v62 = vld [vmem:[%s5157_s2 + $0x98] sm:$0xff]  ;;  %v2993_v45 = vld [vmem:[%s5157_s2 + $0xa0] sm:$0xff] }
 0x46a   : > { %v3664_v44 = vpack.c.bf16 %v2992_v62, %v2991_v29  ;;  %v3668_v50 = vpack.c.bf16 %v2994_v46, %v2993_v45 }
 0x46b   : > { %v1568_v47 = vmax.f32 %v1558_v2, 0.0  ;;  %v1567_v16 = vmax.f32 %v1555_v1, 0.0  ;;  %3394 = vmatprep.subr.bf16.mxu0 %v1575_v20 }
 0x46c   : > { %3395 = vmatpush3.bf16.msra.mxu0 %v1575_v20 }
 0x46d   : > { %v1576_v56 = vpack.c.bf16 %v1568_v47, %v1567_v16 }
 0x46f   : > { %3396 = vmatprep.subr.bf16.mxu0 %v1576_v56 }
 0x470   : > { %3397 = vmatpush3.bf16.msra.mxu0 %v1576_v56 }
 0x471   : > { %3661 = vmatprep.subr.bf16.mxu0 %v3660_v31 }
 0x473   : > { %3399 = vmatmul.mubr.msk.bf16.vlgmr.msra.gmra.mrb[36].mxu0 %vm1611_vm1, %v3902_v39 }
 0x474   : > { %3663 = vmatpush3.bf16.msra.mxu0 %v3660_v31 }
 0x475   : > { %3665 = vmatprep.subr.bf16.mxu0 %v3664_v44 }
 0x478   : > { %3667 = vmatpush3.bf16.msra.mxu0 %v3664_v44 }
 0x479   : > { %3669 = vmatprep.subr.bf16.mxu0 %v3668_v50 }
 0x47c   : > { %3671 = vmatpush3.bf16.msra.mxu0 %v3668_v50 }
 0x47d   : > { %3673 = vmatprep.subr.bf16.mxu0 %v3672_v38 }
 0x480   : > { %3675 = vmatpush3.bf16.msra.mxu0 %v3672_v38 }
 0x481   : > { %3677 = vmatprep.subr.bf16.mxu0 %v3676_v60 }
 0x484   : > { %3679 = vmatpush3.bf16.msra.mxu0 %v3676_v60 }
 0x485   : > { %3681 = vmatprep.subr.bf16.mxu0 %v3680_v26 }
 0x488   : > { %3683 = vmatpush3.bf16.msra.mxu0 %v3680_v26  ;;  %v1926_v26 = vld [vmem:[%s5166_s11] sm:$0xff] }
 0x489   : > { %3685 = vmatprep.subr.bf16.mxu0 %v3684_v8 }
 0x48c   : > { %3687 = vmatpush3.bf16.msra.mxu0 %v3684_v8 }
 0x48d   : > { %3689 = vmatprep.subr.bf16.mxu0 %v3688_v7 }
 0x490   : > { %3691 = vmatpush3.bf16.msra.mxu0 %v3688_v7 }
 0x4b7   : > { %v3436_v12 = vpop.f32.mrb[40].mxu1 }
 0x4b8   : > { %v1753_v13 = vpop.f32.mrb[41].mxu1 }
 0x4b9   : > { %v3692_v17 = vpack.c.bf16 %v3436_v12, %v1753_v13 }
 0x4bb   : > { %v3439_v18 = vpop.f32.mrb[42].mxu1  ;;  %3693 = vmatprep.subr.bf16.mxu1 %v3692_v17 }
 0x4bc   : > { %v1763_v41 = vpop.f32.mrb[43].mxu1  ;;  %3695 = vmatpush3.bf16.msra.mxu1 %v3692_v17 }
 0x4c6   : > { %v3845_v19 = vpop.permute.xlu1 %3844 }
 0x4c7   : > { %v3847_v40 = vunpack.i.h.bf16 %v3845_v19  ;;  %v3846_v11 = vunpack.i.l.bf16 %v3845_v19 }
 0x4c9   : > { %v1821_v43 = vmax.f32 %v4809_v54, %v3847_v40  ;;  %v1820_v9 = vmax.f32 %v4812_v57, %v3846_v11  ;;  %v3696_v54 = vpack.c.bf16 %v3439_v18, %v1763_v41  ;;  %v1930_v57 = vld [vmem:[%s5165_s10] sm:$0xff] }
 0x4ca   : > { %v3850_v15 = vpop.permute.xlu0 %3849  ;;  %3494 = vmatprep.mubr.msk.f32.mxu1 %vm1611_vm1, %v1930_v57 }
 0x4cb   : > { %v3852_v25 = vunpack.i.h.bf16 %v3850_v15  ;;  %v3851_v49 = vunpack.i.l.bf16 %v3850_v15  ;;  %3472 = vmatprep.mubr.f32.mxu0 %v1820_v9  ;;  %3697 = vmatprep.subr.bf16.mxu1 %v3696_v54  ;;  %v1927_v9 = vld [vmem:[%s5166_s11 + $0x8] sm:$0xff]  ;;  %v1928_v15 = vld [vmem:[%s5166_s11 + $0x10] sm:$0xff] }
 0x4cc   : > { %3473 = vmatmul.mubr.f32.vlgmr.msra.gmra.mrb[40].mxu0 %v1821_v43  ;;  %3699 = vmatpush3.bf16.msra.mxu1 %v3696_v54 }
 0x4cd   : > { %v1823_v55 = vmax.f32 %v4817_v0, %v3852_v25  ;;  %v1822_v27 = vmax.f32 %v4820_v4, %v3851_v49  ;;  %v1929_v25 = vld [vmem:[%s5166_s11 + $0x18] sm:$0xff]  ;;  %v4950_v49 = vld [vmem:[%s5158_s3] sm:$0xff] }
 0x4cf   : > { %3475 = vmatprep.mubr.f32.mxu0 %v1822_v27 }
 0x4d0   : > { %3476 = vmatmul.mubr.f32.gmra.mrb[42].mxu0 %v1823_v55 }
 0x4d1   : > { %3508 = vmatprep.mubr.msk.f32.mxu0 %vm948_vm0, %v1926_v26  ;;  %v3905_v26 = vld [vmem:[%s5164_s9 + $0x4] ss:$8 sps:$4 sm:$0xff]  }
 0x4d7   : > { %v1584_v0 = vpop.permute.xlu1 %1583 }
 0x4db   : > { %v1589_v4 = vpop.permute.xlu0 %1588  ;;  %v1594_v3 = vpop.permute.xlu1 %1593 }
 0x4df   : > { %v1599_v31 = vpop.permute.xlu0 %1598 }
 0x546   : > { %v3400_v14 = vpop.f32.mrb[36].mxu0 }
 0x547   : > { %v1652_v20 = vpop.f32.mrb[37].mxu0  ;;  %v1661_v47 = vadd.f32 %v3400_v14, %v1594_v3 }
 0x548   : > { %v1653_v2 = vadd.f32 %v1652_v20, %v1584_v0  ;;  %v3401_v1 = vpop.f32.mrb[38].mxu0 }
 0x549   : > { %v1655_v59 = vpop.f32.mrb[39].mxu0  ;;  %v1664_v29 = vadd.f32 %v3401_v1, %v1599_v31  ;;  %v4902_v39 = vmax.f32 %v1661_v47, 0.0 }
 0x54a   : > { %v4896_v16 = vmax.f32 %v1653_v2, 0.0  ;;  %v1656_v56 = vadd.f32 %v1655_v59, %v1589_v4 }
 0x54b   : > { %v4906_v44 = vmax.f32 %v1664_v29, 0.0 }
 0x54c   : > { %v4898_v62 = vmax.f32 %v1656_v56, 0.0  ;;  %2255 = vrot.lane.b32.xlu1 %v4896_v16, %s5181_s29 }
 0x54d   : > { %v2308_v63 = vpack.c.bf16 %v4906_v44, %v4902_v39 }
 0x54e   : > { %2257 = vrot.lane.b32.xlu0 %v4898_v62, %s5181_s29  ;;  %v2307_v60 = vpack.c.bf16 %v4898_v62, %v4896_v16 }
 0x550   : > { %2259 = vrot.lane.b32.xlu1 %v4902_v39, %s5181_s29 }
 0x552   : > { %2261 = vrot.lane.b32.xlu0 %v4906_v44, %s5181_s29 }
 0x59f   : > { %v3474_v45 = vpop.f32.mrb[40].mxu0 }
 0x5a0   : > { %v1907_v46 = vpop.f32.mrb[41].mxu0 }
 0x5a1   : > { %v3700_v50 = vpack.c.bf16 %v3474_v45, %v1907_v46 }
 0x5a3   : > { %v3477_v36 = vpop.f32.mrb[42].mxu0  ;;  %3701 = vmatprep.subr.bf16.mxu1 %v3700_v50 }
 0x5a4   : > { %v1917_v51 = vpop.f32.mrb[43].mxu0  ;;  %3703 = vmatpush3.bf16.msra.mxu1 %v3700_v50 }
 0x5a5   : > { %v3704_v38 = vpack.c.bf16 %v3477_v36, %v1917_v51 }
 0x5a7   : > { %3705 = vmatprep.subr.bf16.mxu1 %v3704_v38 }
 0x5a8   : > { %3707 = vmatpush3.bf16.msra.mxu1 %v3704_v38 }
 0x5a9   : > { %2367 = vmatprep.subr.bf16.mxu1 %v4023_v42 }
 0x5ab   : > { %3495 = vmatmul.mubr.msk.f32.vlgmr.msra.gmra.mrb[44].mxu1 %vm1611_vm1, %v1931_v52 }
 0x5ac   : > { %2368 = vmatpush1.bf16.msra.mxu1 %v2307_v60  ;;  %3497 = vmatprep.mubr.msk.f32.mxu1 %vm1611_vm1, %v1932_v24 }
 0x5ad   : > { %2369 = vmatprep.subr.bf16.mxu1 %v4023_v42 }
 0x5af   : > { %3498 = vmatmul.mubr.msk.f32.gmra.mrb[46].mxu1 %vm1611_vm1, %v1933_v61 }
 0x5b0   : > { %2370 = vmatpush1.bf16.msra.mxu1 %v2308_v63  ;;  %3021 = vmatprep.mubr.msk.bf16.mxu1 %vm1611_vm1, %v3905_v26 }
 0x5b1   : > { %2371 = vmatprep.subr.bf16.mxu1 %v4023_v42 }
 0x5c0   : > { %v2258_v36 = vpop.permute.xlu0 %2257 }
 0x5c4   : > { %v2262_v24 = vpop.permute.xlu0 %2261 }
 0x67e   : > { %v3496_v48 = vpop.f32.mrb[44].mxu1 }
 0x67f   : > { %v2032_v5 = vmax.f32 %v3496_v48, 0.0  ;;  %v2012_v8 = vpop.f32.mrb[45].mxu1 }
 0x680   : > { %v2031_v10 = vmax.f32 %v2012_v8, 0.0 }
 0x682   : > { %v3708_v6 = vpack.c.bf16 %v2032_v5, %v2031_v10  ;;  %v3499_v7 = vpop.f32.mrb[46].mxu1 }
 0x683   : > { %v2034_v19 = vmax.f32 %v3499_v7, 0.0  ;;  %v2022_v40 = vpop.f32.mrb[47].mxu1 }
 0x684   : > { %v2033_v11 = vmax.f32 %v2022_v40, 0.0  ;;  %3709 = vmatprep.subr.bf16.mxu0 %v3708_v6 }
 0x685   : > { %3711 = vmatpush3.bf16.msra.mxu0 %v3708_v6 }
 0x686   : > { %v3712_v43 = vpack.c.bf16 %v2034_v19, %v2033_v11 }
 0x688   : > { %3713 = vmatprep.subr.bf16.mxu0 %v3712_v43 }
 0x689   : > { %3715 = vmatpush3.bf16.msra.mxu0 %v3712_v43 }
 0x68a   : > { %3514 = vmatprep.subr.mxu0 %v4950_v49 }
 0x68c   : > { %3509 = vmatmul.mubr.msk.f32.vlgmr.msra.gmra.mrb[44].mxu0 %vm948_vm0, %v1927_v9 }
 0x68d   : > { %3511 = vmatprep.mubr.msk.f32.mxu0 %vm948_vm0, %v1928_v15  ;;  %3515 = vmatpush3.msra.mxu0 %v4950_v49 }
 0x68e   : > { %3717 = vmatprep.subr.bf16.mxu0 %v4734_v23 }
 0x690   : > { %3512 = vmatmul.mubr.msk.f32.gmra.mrb[46].mxu0 %vm948_vm0, %v1929_v25  ;;  %v3946_v25 = vld [vmem:[%s5159_s4 + $0x2] ss:$0 sm:$0xff] }
 0x75f   : > { %v3510_v55 = vpop.f32.mrb[44].mxu0 }
 0x760   : > { %v2133_v27 = vsub.f32 0.0, %v3510_v55  ;;  %v2113_v12 = vpop.f32.mrb[45].mxu0 }
 0x761   : > { %v2132_v13 = vsub.f32 0.0, %v2113_v12 }
 0x762   : > { %v2138_v17 = vmul.f32 1.442695, %v2133_v27 }
 0x763   : > { %v2136_v18 = vmul.f32 1.442695, %v2132_v13  ;;  %v3513_v41 = vpop.f32.mrb[46].mxu0 }
 0x764   : > { %3909 = vpow2.f32 %v2138_v17  ;;  %v2135_v54 = vsub.f32 0.0, %v3513_v41  ;;  %v2123_v57 = vpop.f32.mrb[47].mxu0 }
 0x765   : > { %3911 = vpow2.f32 %v2136_v18  ;;  %v2134_v0 = vsub.f32 0.0, %v2123_v57 }
 0x766   : > { %v2142_v4 = vmul.f32 1.442695, %v2135_v54 }
 0x767   : > { %v2140_v14 = vmul.f32 1.442695, %v2134_v0 }
 0x768   : > { %3913 = vpow2.f32 %v2142_v4 }
 0x769   : > { %3915 = vpow2.f32 %v2140_v14 }
 0x76e   : > { %v3910_v20 = vpop.eup %3909 }
 0x76f   : > { %v3912_v2 = vpop.eup %3911  ;;  %v2145_v1 = vadd.f32 1.0, %v3910_v20 }
 0x770   : > { %v2144_v3 = vadd.f32 1.0, %v3912_v2 }
 0x772   : > { %v3914_v59 = vpop.eup %3913  ;;  %3917 = vrcp.f32 %v2144_v3 }
 0x773   : > { %v3916_v47 = vpop.eup %3915  ;;  %3919 = vrcp.f32 %v2145_v1  ;;  %v2147_v56 = vadd.f32 1.0, %v3914_v59 }
 0x774   : > { %v2146_v31 = vadd.f32 1.0, %v3916_v47 }
 0x776   : > { %3921 = vrcp.f32 %v2146_v31  ;;  %v3903_v31 = vld [vmem:[%s5164_s9] ss:$8 sps:$4 sm:$0xff]  }
 0x777   : > { %3923 = vrcp.f32 %v2147_v56 }
 0x77c   : > { %v3918_v29 = vpop.eup %3917 }
 0x77d   : > { %v3920_v45 = vpop.eup %3919  ;;  %3516 = vmatprep.mubr.msk.f32.mxu0 %vm2153_vm2, %v3918_v29  ;;  %v3906_v29 = vld [vmem:[%s5164_s9 + $0x14] ss:$8 sps:$4 sm:$0xff]  }
 0x77e   : > { %3517 = vmatmul.mubr.msk.f32.vlgmr.msra.gmra.mrb[48].mxu0 %vm2153_vm2, %v3920_v45  ;;  %v3908_v45 = vld [vmem:[%s5164_s9 + $0x10] ss:$8 sps:$4 sm:$0xff]  }
 0x77f   : > { %3719 = vmatpush3.bf16.msra.mxu0 %v4734_v23 }
 0x780   : > { %v3922_v46 = vpop.eup %3921  ;;  %3721 = vmatprep.subr.bf16.mxu0 %v4739_v58 }
 0x781   : > { %v3924_v50 = vpop.eup %3923  ;;  %3519 = vmatprep.mubr.msk.f32.mxu0 %vm2153_vm2, %v3922_v46 }
 0x782   : > { %3520 = vmatmul.mubr.msk.f32.gmra.mrb[50].mxu0 %vm2153_vm2, %v3924_v50 }
 0x783   : > { %3723 = vmatpush3.bf16.msra.mxu0 %v4739_v58 }
 0x784   : > { %3725 = vmatprep.subr.bf16.mxu0 %v4750_v21 }
 0x787   : > { %3727 = vmatpush3.bf16.msra.mxu0 %v4750_v21 }
 0x788   : > { %3729 = vmatprep.subr.bf16.mxu0 %v4760_v33 }
 0x78b   : > { %3731 = vmatpush3.bf16.msra.mxu0 %v4760_v33 }
 0x78c   : > { %3733 = vmatprep.subr.bf16.mxu0 %v4770_v34 }
 0x78f   : > { %3735 = vmatpush3.bf16.msra.mxu0 %v4770_v34 }
 0x790   : > { %3737 = vmatprep.subr.bf16.mxu0 %v4780_v22 }
 0x793   : > { %3739 = vmatpush3.bf16.msra.mxu0 %v4780_v22  ;;  %v2256_v22 = vpop.permute.xlu1 %2255 }
 0x794   : > { %3741 = vmatprep.subr.bf16.mxu0 %v4790_v37 }
 0x797   : > { %3743 = vmatpush3.bf16.msra.mxu0 %v4790_v37 }
 0x798   : > { %3745 = vmatprep.subr.bf16.mxu0 %v4800_v53 }
 0x79b   : > { %3747 = vmatpush3.bf16.msra.mxu0 %v4800_v53 }
 0x851   : > { %v3518_v23 = vpop.f32.mrb[48].mxu0 }
 0x852   : > { %v2252_v58 = vmul.f32 %v3518_v23, %v4214_v28  ;;  %v2232_v21 = vpop.f32.mrb[49].mxu0  ;;  %v3945_v28 = vld [vmem:[%s5159_s4 + $0x1] ss:$0 sm:$0xff] }
 0x853   : > { %v2251_v33 = vmul.f32 %v2232_v21, %v4220_v30  ;;  %v2272_v30 = vmul.f32 %v3945_v28, %v2258_v36  ;;  %v2271_v60 = vmul.f32 %v3945_v28, %v2256_v22  ;;  %v2274_v61 = vmul.f32 %v3945_v28, %v2262_v24 }
 0x854   : > { %2265 = vrot.lane.b32.xlu0 %v2252_v58, %s5181_s29 }
 0x855   : > { %v2309_v34 = vpack.c.bf16 %v2252_v58, %v2251_v33  ;;  %v3521_v51 = vpop.f32.mrb[50].mxu0  ;;  %2263 = vrot.lane.b32.xlu1 %v2251_v33, %s5181_s29 }
 0x856   : > { %v2254_v37 = vmul.f32 %v3521_v51, %v4228_v32  ;;  %v2242_v38 = vpop.f32.mrb[51].mxu0  ;;  %v2260_v32 = vpop.permute.xlu1 %2259 }
 0x857   : > { %v2253_v52 = vmul.f32 %v2242_v38, %v4236_v35  ;;  %2372 = vmatpush1.bf16.msra.mxu1 %v2309_v34  ;;  %v2311_v35 = vpack.c.bf16 %v2272_v30, %v2271_v60  ;;  %v2273_v63 = vmul.f32 %v3945_v28, %v2260_v32 }
 0x858   : > { %2269 = vrot.lane.b32.xlu0 %v2254_v37, %s5181_s29  ;;  %2373 = vmatprep.subr.bf16.mxu1 %v4023_v42 }
 0x859   : > { %v2310_v53 = vpack.c.bf16 %v2254_v37, %v2253_v52  ;;  %2267 = vrot.lane.b32.xlu1 %v2253_v52, %s5181_s29  ;;  %v2312_v48 = vpack.c.bf16 %v2274_v61, %v2273_v63 }
 0x85b   : > { %2374 = vmatpush1.bf16.msra.mxu1 %v2310_v53 }
 0x85c   : > { %2281 = vrot.lane.b32.xlu0 %v4898_v62, %s5182_s30  ;;  %2375 = vmatprep.subr.bf16.mxu1 %v4023_v42  ;;  %v2319_v62 = vld [vmem:[%s5160_s5 + $0xe0] sm:$0xff] }
 0x85d   : > { %2279 = vrot.lane.b32.xlu1 %v4896_v16, %s5182_s30  ;;  %v2320_v16 = vld [vmem:[%s5160_s5 + $0xe8] sm:$0xff] }
 0x85f   : > { %2376 = vmatpush1.bf16.msra.mxu1 %v2311_v35  ;;  %v3027_v35 = vld [vmem:[%s5166_s11 + $0x20] sm:$0xff] }
 0x860   : > { %2285 = vrot.lane.b32.xlu0 %v4906_v44, %s5182_s30  ;;  %2377 = vmatprep.subr.bf16.mxu1 %v4023_v42  ;;  %v2321_v44 = vld [vmem:[%s5160_s5 + $0xf0] sm:$0xff] }
 0x861   : > { %2283 = vrot.lane.b32.xlu1 %v4902_v39, %s5182_s30  ;;  %v2322_v39 = vld [vmem:[%s5160_s5 + $0xf8] sm:$0xff] }
 0x863   : > { %2378 = vmatpush1.bf16.msra.mxu1 %v2312_v48 }
 0x864   : > { %2289 = vrot.lane.b32.xlu0 %v2252_v58, %s5182_s30  ;;  %2379 = vmatprep.subr.bf16.mxu1 %v4023_v42 }
 0x865   : > { %2287 = vrot.lane.b32.xlu1 %v2251_v33, %s5182_s30 }
 0x868   : > { %2293 = vrot.lane.b32.xlu0 %v2254_v37, %s5182_s30 }
 0x869   : > { %2291 = vrot.lane.b32.xlu1 %v2253_v52, %s5182_s30  ;;  %s404_s30 = sand.u32 1, %s4005_s22  }
 0x86a   : > { %s2922_s16 = sshll.u32 %s404_s30, 5  ;;  %s5114_s0 = scalar_lea.sflag [#allocation3], %s404_s30 }
 0x86b   : > { %s406_s29 = scalar_lea.vmem [#allocation2], %s2922_s16 }
 0x86c   : > { %2330 = vperm.xlu0 %3821, %v2320_v16   ;;  %s2856_s17 = sshll.u32 %s406_s29, 4  ;;  %s5105_s17 = int_to_ptr.vmem [resolvable:$true] %s2856_s17 }
 0x86d   : > { %2325 = vperm.xlu1 %3822, %v2319_v62   ;;  %s3951_s23 = scalar_lea.vmem %s5105_s17, 512  ;;  %p3958_p0 = scmp.lt.s32.totalorder %s5105_s17, %s3956_s20 }
 0x86e   : > { %p3952_p11 = scmp.ne.s32.totalorder %s5105_s17, %s3951_s23  ;;  %p3959_p1 = scmp.lt.s32.totalorder %s3957_s28, %s3951_s23 }
 0x870   : > { %2340 = vperm.xlu0 %3821, %v2322_v39   ;;  %v3028_v39 = vld [vmem:[%s5166_s11 + $0x28] sm:$0xff]  ;;  %p3953_p12 = pnand %p3952_p11, %p4133_p5  ;;  %p3960_p2 = por %p3959_p1, %p3958_p0 }
 0x871   : > { %2335 = vperm.xlu1 %3822, %v2321_v44   ;;  %v3029_v44 = vld [vmem:[%s5166_s11 + $0x30] sm:$0xff] }
 0x872   : > { %p3954_p13 = pneg %p3953_p12 }
 0x874   : > { %p3961_p3 = pnand %p3960_p2, %p3954_p13 }
 0x8c6   : > { %v2266_v5 = vpop.permute.xlu0 %2265 }
 0x8c7   : > { %v2276_v8 = vmul.f32 %v3945_v28, %v2266_v5  ;;  %v2264_v10 = vpop.permute.xlu1 %2263  ;;  %v3030_v5 = vld [vmem:[%s5166_s11 + $0x38] sm:$0xff] }
 0x8c8   : > { %v2275_v6 = vmul.f32 %v3945_v28, %v2264_v10  ;;  %v3025_v10 = vld [vmem:[%s5166_s11 + $0x50] sm:$0xff] }
 0x8ca   : > { %v2313_v7 = vpack.c.bf16 %v2276_v8, %v2275_v6  ;;  %v2270_v19 = vpop.permute.xlu0 %2269  ;;  %v3023_v8 = vld [vmem:[%s5166_s11 + $0x40] sm:$0xff] }
 0x8cb   : > { %v2278_v40 = vmul.f32 %v3945_v28, %v2270_v19  ;;  %v2268_v11 = vpop.permute.xlu1 %2267 }
 0x8cc   : > { %v2277_v43 = vmul.f32 %v3945_v28, %v2268_v11  ;;  %2380 = vmatpush1.bf16.msra.mxu1 %v2313_v7 }
 0x8cd   : > { %2381 = vmatprep.subr.bf16.mxu1 %v4023_v42 }
 0x8ce   : > { %v2314_v9 = vpack.c.bf16 %v2278_v40, %v2277_v43  ;;  %v2282_v15 = vpop.permute.xlu0 %2281 }
 0x8cf   : > { %v2296_v55 = vmul.f32 %v3946_v25, %v2282_v15  ;;  %v2280_v27 = vpop.permute.xlu1 %2279 }
 0x8d0   : > { %v2295_v12 = vmul.f32 %v3946_v25, %v2280_v27  ;;  %2382 = vmatpush1.bf16.msra.mxu1 %v2314_v9  ;;  %v3024_v27 = vld [vmem:[%s5166_s11 + $0x48] sm:$0xff] }
 0x8d1   : > { %2383 = vmatprep.subr.bf16.mxu1 %v4023_v42 }
 0x8d2   : > { %v2315_v13 = vpack.c.bf16 %v2296_v55, %v2295_v12  ;;  %v2286_v17 = vpop.permute.xlu0 %2285  ;;  %v3026_v12 = vld [vmem:[%s5166_s11 + $0x58] sm:$0xff] }
 0x8d3   : > { %v2298_v18 = vmul.f32 %v3946_v25, %v2286_v17  ;;  %v2284_v41 = vpop.permute.xlu1 %2283 }
 0x8d4   : > { %v2297_v54 = vmul.f32 %v3946_v25, %v2284_v41  ;;  %2384 = vmatpush1.bf16.msra.mxu1 %v2315_v13 }
 0x8d5   : > { %2385 = vmatprep.subr.bf16.mxu1 %v4023_v42 }
 0x8d6   : > { %v2316_v57 = vpack.c.bf16 %v2298_v18, %v2297_v54  ;;  %v2290_v0 = vpop.permute.xlu0 %2289 }
 0x8d7   : > { %v2300_v4 = vmul.f32 %v3946_v25, %v2290_v0  ;;  %v2288_v14 = vpop.permute.xlu1 %2287 }
 0x8d8   : > { %v2299_v20 = vmul.f32 %v3946_v25, %v2288_v14  ;;  %2386 = vmatpush1.bf16.msra.mxu1 %v2316_v57 }
 0x8d9   : > { %2387 = vmatprep.subr.bf16.mxu1 %v4023_v42 }
 0x8da   : > { %v2317_v2 = vpack.c.bf16 %v2300_v4, %v2299_v20  ;;  %v2294_v1 = vpop.permute.xlu0 %2293 }
 0x8db   : > { %v2302_v3 = vmul.f32 %v3946_v25, %v2294_v1  ;;  %v2292_v59 = vpop.permute.xlu1 %2291 }
 0x8dc   : > { %v2301_v47 = vmul.f32 %v3946_v25, %v2292_v59  ;;  %2388 = vmatpush1.bf16.msra.mxu1 %v2317_v2 }
 0x8dd   : > { %2389 = vmatprep.subr.bf16.mxu1 %v4023_v42 }
 0x8de   : > { %v2318_v56 = vpack.c.bf16 %v2302_v3, %v2301_v47 }
 0x8e0   : > { %2390 = vmatpush1.bf16.msra.mxu1 %v2318_v56 }
 0x8e3   : > { %2400 = vmatmul.mubr.bf16.vlgmr.msra.gmra.mrb[48].mxu1 %v3903_v31 }
 0x8e4   : > { %3022 = vmatprep.mubr.msk.bf16.mxu1 %vm1611_vm1, %v3906_v29 }
 0x8eb   : > { %2408 = vmatmul.mubr.bf16.gmra.mrb[52].mxu1 %v3908_v45  ;;  %v2331_v58 = vpop.permute.xlu0 %2330 }
 0x8ec   : > { %v2326_v46 = vpop.permute.xlu1 %2325  ;;  %3585 = vmatprep.mubr.msk.f32.mxu1 %vm948_vm0, %v3025_v10 }
 0x8ef   : > { %v2341_v28 = vpop.permute.xlu0 %2340 }
 0x8f0   : > { %v2336_v22 = vpop.permute.xlu1 %2335 }
 0x9b6   : > { %v2401_v42 = vpop.f32.mrb[48].mxu1 }
 0x9b7   : > { %v5035_v50 = vadd.f32 %v2401_v42, %v2326_v46  ;;  %v2403_v23 = vpop.f32.mrb[49].mxu1 }
 0x9b8   : > { %v2404_v21 = vpop.f32.mrb[50].mxu1 }
 0x9b9   : > { %v2416_v33 = vmax.f32 %v5035_v50, 0.0  ;;  %v5038_v36 = vadd.f32 %v2404_v21, %v2331_v58  ;;  %v2406_v34 = vpop.f32.mrb[51].mxu1 }
 0x9bb   : > { %v2417_v51 = vmax.f32 %v5038_v36, 0.0  ;;  %3554 = vmatprep.mubr.f32.mxu0 %v2416_v33 }
 0x9bd   : > { %3555 = vmatmul.mubr.f32.vlgmr.msra.gmra.mrb[52].mxu0 %v2417_v51 }
 0x9be   : > { %v2409_v37 = vpop.f32.mrb[52].mxu1 }
 0x9bf   : > { %v5045_v38 = vadd.f32 %v2409_v37, %v2336_v22  ;;  %v2411_v52 = vpop.f32.mrb[53].mxu1 }
 0x9c0   : > { %v2412_v30 = vpop.f32.mrb[54].mxu1  ;;  %v3947_v52 = vld [vmem:[%s4166_s26 + $0x8] sm:$0xff] }
 0x9c1   : > { %v2418_v53 = vmax.f32 %v5045_v38, 0.0  ;;  %v5048_v24 = vadd.f32 %v2412_v30, %v2341_v28  ;;  %v2414_v60 = vpop.f32.mrb[55].mxu1  ;;  %v3948_v30 = vld [vmem:[%s4166_s26] sm:$0xff] }
 0x9c3   : > { %v2419_v32 = vmax.f32 %v5048_v24, 0.0  ;;  %3557 = vmatprep.mubr.f32.mxu0 %v2418_v53  ;;  %v3950_v24 = vld [vmem:[%s4166_s26 + $0x10] sm:$0xff] }
 0x9c5   : > { %3558 = vmatmul.mubr.f32.gmra.mrb[54].mxu0 %v2419_v32 }
 0x9c6   : > { %3568 = vmatprep.mubr.msk.f32.mxu0 %vm948_vm0, %v3027_v35 }
 0xa90   : > { %v3556_v61 = vpop.f32.mrb[52].mxu0 }
 0xa91   : > { %v2486_v63 = vpop.f32.mrb[53].mxu0 }
 0xa92   : > { %v3748_v26 = vpack.c.bf16 %v3556_v61, %v2486_v63 }
 0xa94   : > { %3749 = vmatprep.subr.bf16.mxu0 %v3748_v26 }
 0xa95   : > { %3751 = vmatpush3.bf16.msra.mxu0 %v3748_v26 }
 0xa98   : > { %v3559_v48 = vpop.f32.mrb[54].mxu0 }
 0xa99   : > { %v2496_v16 = vpop.f32.mrb[55].mxu0 }
 0xa9a   : > { %v3752_v62 = vpack.c.bf16 %v3559_v48, %v2496_v16 }
 0xa9c   : > { %3753 = vmatprep.subr.bf16.mxu0 %v3752_v62 }
 0xa9d   : > { %3755 = vmatpush3.bf16.msra.mxu0 %v3752_v62 }
 0xaa0   : > { %3569 = vmatmul.mubr.msk.f32.vlgmr.msra.gmra.mrb[56].mxu0 %vm948_vm0, %v3028_v39 }
 0xaa1   : > { %3571 = vmatprep.mubr.msk.f32.mxu0 %vm948_vm0, %v3029_v44 }
 0xaa4   : > { %3572 = vmatmul.mubr.msk.f32.gmra.mrb[58].mxu0 %vm948_vm0, %v3030_v5 }
 0xaa5   : > { %3582 = vmatprep.mubr.msk.f32.mxu0 %vm948_vm0, %v3023_v8 }
 0xb73   : > { %v3570_v6 = vpop.f32.mrb[56].mxu0 }
 0xb74   : > { %v2613_v7 = vmax.f32 %v3570_v6, 0.0  ;;  %v2593_v19 = vpop.f32.mrb[57].mxu0 }
 0xb75   : > { %v2612_v40 = vmax.f32 %v2593_v19, 0.0 }
 0xb77   : > { %v3756_v11 = vpack.c.bf16 %v2613_v7, %v2612_v40  ;;  %v3573_v43 = vpop.f32.mrb[58].mxu0 }
 0xb78   : > { %v2615_v9 = vmax.f32 %v3573_v43, 0.0  ;;  %v2603_v15 = vpop.f32.mrb[59].mxu0 }
 0xb79   : > { %v2614_v25 = vmax.f32 %v2603_v15, 0.0  ;;  %3757 = vmatprep.subr.bf16.mxu0 %v3756_v11  ;;  %3764 = vmatprep.subr.bf16.mxu1 %v3756_v11 }
 0xb7a   : > { %3759 = vmatpush3.bf16.msra.mxu0 %v3756_v11  ;;  %3766 = vmatpush3.bf16.msra.mxu1 %v3756_v11 }
 0xb7b   : > { %v3760_v55 = vpack.c.bf16 %v2615_v9, %v2614_v25 }
 0xb7d   : > { %3761 = vmatprep.subr.bf16.mxu0 %v3760_v55  ;;  %3765 = vmatprep.subr.bf16.mxu1 %v3760_v55 }
 0xb7e   : > { %3763 = vmatpush3.bf16.msra.mxu0 %v3760_v55  ;;  %3767 = vmatpush3.bf16.msra.mxu1 %v3760_v55 }
 0xb7f   : > { %3588 = vmatprep.subr.mxu0 %v4950_v49 }
 0xb81   : > { %3583 = vmatmul.mubr.msk.f32.vlgmr.msra.gmra.mrb[60].mxu0 %vm948_vm0, %v3024_v27  ;;  %3586 = vmatmul.mubr.msk.f32.vlgmr.msra.gmra.mrb[56].mxu1 %vm948_vm0, %v3026_v12 }
 0xb82   : > { %3589 = vmatpush3.msra.mxu0 %v4950_v49 }
 0xc54   : > { %v3584_v13 = vpop.f32.mrb[60].mxu0  ;;  %v3587_v17 = vpop.f32.mrb[56].mxu1 }
 0xc55   : > { %v2714_v18 = vsub.f32 0.0, %v3584_v13  ;;  %v2694_v41 = vpop.f32.mrb[61].mxu0  ;;  %v2716_v54 = vsub.f32 0.0, %v3587_v17  ;;  %v2704_v57 = vpop.f32.mrb[57].mxu1 }
 0xc56   : > { %v2713_v0 = vsub.f32 0.0, %v2694_v41  ;;  %v2715_v4 = vsub.f32 0.0, %v2704_v57 }
 0xc57   : > { %v2719_v14 = vmul.f32 1.442695, %v2714_v18  ;;  %v2723_v20 = vmul.f32 1.442695, %v2716_v54 }
 0xc58   : > { %v2717_v2 = vmul.f32 1.442695, %v2713_v0  ;;  %v2721_v1 = vmul.f32 1.442695, %v2715_v4 }
 0xc59   : > { %3925 = vpow2.f32 %v2719_v14 }
 0xc5a   : > { %3927 = vpow2.f32 %v2717_v2 }
 0xc5b   : > { %3929 = vpow2.f32 %v2723_v20 }
 0xc5c   : > { %3931 = vpow2.f32 %v2721_v1 }
 0xc63   : > { %v3926_v3 = vpop.eup %3925 }
 0xc64   : > { %v3928_v59 = vpop.eup %3927  ;;  %v2726_v47 = vadd.f32 1.0, %v3926_v3 }
 0xc65   : > { %v3930_v49 = vpop.eup %3929  ;;  %v2725_v56 = vadd.f32 1.0, %v3928_v59 }
 0xc66   : > { %v3932_v31 = vpop.eup %3931  ;;  %v2728_v45 = vadd.f32 1.0, %v3930_v49 }
 0xc67   : > { %3933 = vrcp.f32 %v2725_v56  ;;  %v2727_v29 = vadd.f32 1.0, %v3932_v31 }
 0xc68   : > { %3935 = vrcp.f32 %v2726_v47 }
 0xc69   : > { %3937 = vrcp.f32 %v2727_v29 }
 0xc6a   : > { %3939 = vrcp.f32 %v2728_v45 }
 0xc71   : > { %v3934_v46 = vpop.eup %3933 }
 0xc72   : > { %v3936_v42 = vpop.eup %3935  ;;  %3590 = vmatprep.mubr.msk.f32.mxu0 %vm2153_vm2, %v3934_v46 }
 0xc73   : > { %v3938_v23 = vpop.eup %3937  ;;  %3591 = vmatmul.mubr.msk.f32.vlgmr.msra.gmra.mrb[62].mxu0 %vm2153_vm2, %v3936_v42 }
 0xc74   : > { %3593 = vmatprep.mubr.msk.f32.mxu0 %vm2153_vm2, %v3938_v23  ;;  %v3940_v58 = vpop.eup %3939 }
 0xc77   : > { %3594 = vmatmul.mubr.msk.f32.gmra.mrb[64].mxu0 %vm2153_vm2, %v3940_v58 }
 0xd46   : > { %v3592_v21 = vpop.f32.mrb[62].mxu0 }
 0xd47   : > { %v2831_v34 = vmul.f32 %v3592_v21, %v2417_v51  ;;  %v2811_v22 = vpop.f32.mrb[63].mxu0 }
 0xd48   : > { %v2830_v37 = vmul.f32 %v2811_v22, %v2416_v33  ;;  %v3949_v33 = vld [vmem:[%s4166_s26 + $0x18] sm:$0xff] }
 0xd49   : > { %v2835_v28 = vadd.f32 %v3947_v52, %v2831_v34 }
 0xd4a   : > { %v2834_v60 = vadd.f32 %v3948_v30, %v2830_v37  ;;  %v3595_v35 = vpop.f32.mrb[64].mxu0 }
 0xd4b   : > { %2839 = vst [vmem:[%s406_s29 + $0x8] sm:$0xff] %v2835_v28  ;;  %v2833_v36 = vmul.f32 %v3595_v35, %v2419_v32  ;;  %v2821_v51 = vpop.f32.mrb[65].mxu0 }
 0xd4c   : > { %2838 = vst [vmem:[%s406_s29] sm:$0xff] %v2834_v60  ;;  %v2832_v50 = vmul.f32 %v2821_v51, %v2418_v53 }
 0xd4d   : > { %v2837_v61 = vadd.f32 %v3949_v33, %v2833_v36 }
 0xd4e   : > { %v2836_v63 = vadd.f32 %v3950_v24, %v2832_v50 }
 0xd4f   : > { %2841 = vst [vmem:[%s406_s29 + $0x18] sm:$0xff] %v2837_v61 }
 0xd50   : > { %2840 = vst [vmem:[%s406_s29 + $0x10] sm:$0xff] %v2836_v63 }
 0xd51   : > { %3964 = shalt.err (!%p3961_p3)
}
 0xd52   : > { %s3965_s26 = scalar_lea.hbm %s5111_s25, 512  ;;  %s3969_s29 = scalar_lea.hbm %s5167_s12, 1024 }
 0xd53   : > { %p3966_p4 = scmp.ne.s32.totalorder %s5111_s25, %s3965_s26  ;;  %p3970_p9 = scmp.lt.u32.totalorder %s5111_s25, %s5167_s12 }
 0xd54   : > { %p3971_p10 = scmp.lt.u32.totalorder %s3969_s29, %s3965_s26  ;;  %p3973_p12 = scmp.lt.u32.totalorder %s3965_s26, %s5111_s25 }
 0xd55   : > { %p3967_p7 = pnand %p3966_p4, %p4133_p5 }
 0xd56   : > { %p3972_p11 = por %p3971_p10, %p3970_p9 }
 0xd57   : > { %p3968_p8 = pneg %p3967_p7 }
 0xd58   : > { %p3974_p13 = por %p3973_p12, %p3972_p11 }
 0xd5a   : > { %p3975_p0 = pnand %p3974_p13, %p3968_p8 }
 0xd5c   : > { %3978 = shalt.err (!%p3975_p0)
}
 0xd5d   : > { %s4028_s18 = smov 128   ;;  %s4029_s23 = smov 8  }
 0xd5e   : > { %3768 = dma.vmem_to_hbm [thread:$0]  (%p4133_p5), %s5105_s17, 512, %s5111_s25, %s5114_s0, %s4028_s18, %s4028_s18, %s4029_s23  }
 0xd5f PF: > { %p3774_p1 = scmp.ge.s32.totalorder %s4013_s24, 2  ;;  %s2871_s19 = sand.u32 1, %s4001_s21  }
 0xd60   : > { %s2872_s20 = scalar_lea.sflag [#allocation3], %s2871_s19 }
 0xd61   : > { %p3771_p2 = pnand %p3774_p1, %p4137_p6 }
 0xd63   : > { %3996 = dma.done.wait (!%p3771_p2), %s2872_s20, 512  }
 0xd64   : > { %3998 = vsyncadd (!%p3771_p2), %s2872_s20, 4294966784  ;;  %s5183_s28 = sld [smem:[#allocation5_spill]]  ;;  %s5184_s23 = sld [smem:[#allocation6_spill]] }
 0xd65   : > { %p22_p3 = scmp.ge.s32.totalorder %s4120_s27, 4   ;;  %s5185_s21 = smov %s4005_s22 }
 0xd66   : > { %s5187_s24 = smov %s4120_s27 }
 0xd67   :  { %24 = sbr.rel (!%p22_p3) target bundleno = 6 (0x6), region = 114 }
 0xd6a   : > { %s5186_s22 = smov %s5183_s28 }
 0xd6e   :  { %2877 = vsyncpa [#allocation3], 1 }
 0xd6f   :  { %2879 = vsyncpa [#allocation3 + $0x1], 1 }

</bundles_post_ra>
